<compile_context>
chip_gen: v7x
topology: tpu7x:2x2x1
jax: 0.10.0
libtpu: 0.0.40
codegen_flags: <defaults>
</compile_context>

<pallas_src>
import functools
import numpy as np
import jax
import jax.numpy as jnp
from jax.experimental import pallas as pl
from jax.experimental.pallas import tpu as pltpu


# ---------------------------------------------------------------------------
# helpers
# ---------------------------------------------------------------------------

def _cparams(grid_rank=1):
    # batch (and spectrum-tile) axes are "parallel" so v7x's two TensorCores split them.
    return pltpu.CompilerParams(
        dimension_semantics=("parallel",) * grid_rank,
        vmem_limit_bytes=48 * 1024 * 1024,
    )


def _const_spec(shape, grid_rank=1):
    nd = len(shape)
    zeros = (0,) * nd
    if grid_rank == 1:
        return pl.BlockSpec(shape, lambda b: zeros)
    return pl.BlockSpec(shape, lambda b, t: zeros)


def _batch_spec(c, s):
    return pl.BlockSpec((1, c, s), lambda b: (b, 0, 0))


def _pick_tile(s, target=8192):
    """Largest lane-dense tile (multiple of 128) dividing s, capped at `target`."""
    if s <= target:
        return s
    t = (target // 128) * 128
    while t >= 128:
        if s % t == 0:
            return t
        t -= 128
    return s


# ---------------------------------------------------------------------------
# Pallas kernels
# ---------------------------------------------------------------------------

def _stage_a_kernel(x_ref, dftf_ref, a0w1_ref, a0b1_ref, a0w2_ref, a0b2_ref,
                    idft_ref, gavg1_ref, gamma1_ref, beta1_ref,
                    ws_ref, bs_ref, x1_ref, hs_ref,
                    *, cfp, cs, slope, eps, inv_gsize):
    """Channel-axis rfft (stacked DFT matmul) -> ampconv0 -> merged irfft -> +x
    -> GroupNorm(norm1, reduce-first) -> stacked split 1x1 convs (+swish)."""
    x = x_ref[0]                                                     # (C, S)

    # rfft over channels as ONE stacked matmul: rows [0:cfp) = Re, [cfp:2cfp) = Im
    # (rows >= Cf are zero padding so every slice is sublane-tile aligned).
    xf = jnp.dot(dftf_ref[...], x, preferred_element_type=jnp.float32)
    xre, xim = xf[:cfp], xf[cfp:]
    amp = jnp.sqrt(xre * xre + xim * xim)

    # ampconv0: 1x1 -> LeakyReLU(0.1) -> 1x1 (zero-padded rows stay exactly zero).
    a = jnp.dot(a0w1_ref[...], amp, preferred_element_type=jnp.float32) + a0b1_ref[...]
    a = jnp.where(a >= 0.0, a, slope * a)
    a = jnp.dot(a0w2_ref[...], a, preferred_element_type=jnp.float32) + a0b2_ref[...]

    # recombine with the original phase (amplitude-ratio trick; amp==0 -> phase==0).
    nz = amp > 0.0
    scale = a / jnp.where(nz, amp, 1.0)
    yre = jnp.where(nz, scale * xre, a)
    yim = jnp.where(nz, scale * xim, 0.0)

    # merged irfft over channels (single (C, 2Cfp) matmul) + residual.
    y = jnp.concatenate([yre, yim], axis=0)                          # (2Cfp, S)
    h = x + jnp.dot(idft_ref[...], y, preferred_element_type=jnp.float32)

    # GroupNorm(norm1): reduce over the spatial axis FIRST (cheap lane reductions),
    # then apply the tiny (C,C) same-group 0/1 matrix to the (C,1) stats.
    csum = jnp.sum(h, axis=1, keepdims=True)                         # (C, 1)
    mean_c = jnp.dot(gavg1_ref[...], csum,
                     preferred_element_type=jnp.float32) * inv_gsize
    d = h - mean_c
    vsum = jnp.sum(d * d, axis=1, keepdims=True)
    var_c = jnp.dot(gavg1_ref[...], vsum,
                    preferred_element_type=jnp.float32) * inv_gsize
    hn = d * jax.lax.rsqrt(var_c + eps) * gamma1_ref[...] + beta1_ref[...]

    # splitconv1 / splitconv2 stacked into one (2*Cs, C) matmul; swish on half 2.
    s = jnp.dot(ws_ref[...], hn, preferred_element_type=jnp.float32) + bs_ref[...]
    x1_ref[0] = s[:cs]
    hsp = s[cs:]
    hs_ref[0] = hsp * jax.nn.sigmoid(hsp)


def _stage_b_kernel(ap_ref, w1_ref, b1_ref, w2_ref, b2_ref, o_ref, *, cs, slope):
    """Block-diagonally stacked ampconv + phaconv (1x1 -> LeakyReLU(0.1) -> 1x1) on
    the spatial spectrum and the amp*cos / amp*sin recombination.  Input rows
    [0:cs) = amp, [cs:2cs) = pha; output rows [0:cs) = Re, [cs:2cs) = Im."""
    ap = ap_ref[0]                                                   # (2Cs, St)
    s = jnp.dot(w1_ref[...], ap, preferred_element_type=jnp.float32) + b1_ref[...]
    s = jnp.where(s >= 0.0, s, slope * s)
    s = jnp.dot(w2_ref[...], s, preferred_element_type=jnp.float32) + b2_ref[...]
    a = s[:cs]
    p = s[cs:]
    o_ref[0] = jnp.concatenate([a * jnp.cos(p), a * jnp.sin(p)], axis=0)


def _stage_cd_kernel(hs_ref, x1_ref, x11_ref, xres_ref, masks_ref,
                     dwk1_ref, dwb1_ref, pwk1_ref, pwb1_ref,
                     gavg2_ref, gamma2_ref, beta2_ref,
                     dwk2_ref, dwb2_ref, pwk2_ref, pwb2_ref,
                     wx_ref, wh_ref, bm_ref, *rest,
                     img_w, use_nin, eps, inv_gsize):
    """conv1 (dw-sep, roll-based) -> GroupNorm(norm2)+swish -> dropout(identity)
    -> conv2 (dw-sep) -> sigmoid cross-gating -> merge 1x1 conv -> + residual."""
    if use_nin:
        nin_w_ref, nin_b_ref, o_ref = rest
    else:
        (o_ref,) = rest

    hs = hs_ref[0]                                                   # (Cs, S)
    s_len = hs.shape[1]
    masks = masks_ref[...]                                           # (9, S)

    def dw_sep(x, dwk_ref, dwb_ref, pwk_ref, pwb_ref):
        # depthwise 3x3: 8 lane rolls (XLU) of the in-register tile, each scaled by
        # its per-channel tap weight and a boundary mask (zero-padding semantics,
        # masks also kill the roll wraparound), plus the unmasked centre tap,
        # followed by the 1x1 pointwise matmul.
        dwk = dwk_ref[...]                                           # (Cs, 9)
        acc = dwk[:, 4:5] * x                                        # centre tap
        for t in range(9):
            if t == 4:
                continue
            dy, dx = t // 3 - 1, t % 3 - 1
            shift = dy * img_w + dx
            tap = pltpu.roll(x, (-shift) % s_len, axis=1)
            acc = acc + dwk[:, t:t + 1] * (masks[t:t + 1, :] * tap)
        acc = acc + dwb_ref[...]
        return (jnp.dot(pwk_ref[...], acc, preferred_element_type=jnp.float32)
                + pwb_ref[...])

    h1 = dw_sep(hs, dwk1_ref, dwb1_ref, pwk1_ref, pwb1_ref)

    # GroupNorm(norm2) + swish (reduce over lanes first, then tiny group matmul).
    csum = jnp.sum(h1, axis=1, keepdims=True)
    mean_c = jnp.dot(gavg2_ref[...], csum,
                     preferred_element_type=jnp.float32) * inv_gsize
    d = h1 - mean_c
    vsum = jnp.sum(d * d, axis=1, keepdims=True)
    var_c = jnp.dot(gavg2_ref[...], vsum,
                    preferred_element_type=jnp.float32) * inv_gsize
    h2 = d * jax.lax.rsqrt(var_c + eps) * gamma2_ref[...] + beta2_ref[...]
    h2 = h2 * jax.nn.sigmoid(h2)
    # TODO(synk): dropout is eval-mode identity (inference parity only).

    h3 = dw_sep(h2, dwk2_ref, dwb2_ref, pwk2_ref, pwb2_ref)

    # sigmoid cross-gating + merge 1x1 conv (split weights, no in-kernel concat) + residual.
    x1n = x1_ref[0] + x11_ref[0]
    space_score = jax.nn.sigmoid(x1n)
    fre_score = jax.nn.sigmoid(h3)
    hg = h3 * space_score + h3
    x1g = x1n * fre_score + x1n
    y = (jnp.dot(wx_ref[...], x1g, preferred_element_type=jnp.float32)
         + jnp.dot(wh_ref[...], hg, preferred_element_type=jnp.float32)
         + bm_ref[...])
    if use_nin:
        res = (jnp.dot(nin_w_ref[...], xres_ref[0], preferred_element_type=jnp.float32)
               + nin_b_ref[...])
    else:
        res = xres_ref[0]
    o_ref[0] = res + y


# ---------------------------------------------------------------------------
# pallas_call wrappers
# ---------------------------------------------------------------------------

def stage_a(x3, p, num_groups):
    B, C, S = x3.shape
    Cfp = p["dftf"].shape[0] // 2
    Cs = p["ws"].shape[0] // 2
    inv_gsize = 1.0 / float((C // num_groups) * S)
    consts = (p["dftf"], p["amp0_w1"], p["amp0_b1"], p["amp0_w2"], p["amp0_b2"],
              p["idft"], p["gavg1"], p["gamma1"], p["beta1"], p["ws"], p["bs"])
    out_blk = _batch_spec(Cs, S)
    return pl.pallas_call(
        functools.partial(_stage_a_kernel, cfp=Cfp, cs=Cs, slope=0.1, eps=1e-6,
                          inv_gsize=inv_gsize),
        out_shape=(jax.ShapeDtypeStruct((B, Cs, S), jnp.float32),
                   jax.ShapeDtypeStruct((B, Cs, S), jnp.float32)),
        grid=(B,),
        in_specs=[_batch_spec(C, S)] + [_const_spec(c.shape) for c in consts],
        out_specs=(out_blk, out_blk),
        compiler_params=_cparams(1),
    )(x3, *consts)


def stage_b(ap, p):
    """ap: (B, 2*Cs, S2) with rows [0:Cs)=amp, [Cs:2Cs)=pha of the spatial spectrum."""
    B, C2, S2 = ap.shape
    Cs = C2 // 2
    Ts = _pick_tile(S2)
    nt = S2 // Ts
    consts = (p["b_w1"], p["b_b1"], p["b_w2"], p["b_b2"])
    data_spec = pl.BlockSpec((1, C2, Ts), lambda b, t: (b, 0, t))
    return pl.pallas_call(
        functools.partial(_stage_b_kernel, cs=Cs, slope=0.1),
        out_shape=jax.ShapeDtypeStruct((B, C2, S2), jnp.float32),
        grid=(B, nt),
        in_specs=[data_spec] + [_const_spec(c.shape, 2) for c in consts],
        out_specs=data_spec,
        compiler_params=_cparams(2),
    )(ap, *consts)


def stage_cd(hs, x1, x11, x3, masks, p, num_groups, img_w):
    B, Cs, S = hs.shape
    C = x3.shape[1]
    Cout = p["m_wx"].shape[0]
    use_nin = "nin_w" in p
    inv_gsize = 1.0 / float((Cs // num_groups) * S)
    consts = [masks,
              p["c1_dw"], p["c1_dwb"], p["c1_pw"], p["c1_pwb"],
              p["gavg2"], p["gamma2"], p["beta2"],
              p["c2_dw"], p["c2_dwb"], p["c2_pw"], p["c2_pwb"],
              p["m_wx"], p["m_wh"], p["m_b"]]
    if use_nin:
        consts += [p["nin_w"], p["nin_b"]]
    in_specs = ([_batch_spec(Cs, S), _batch_spec(Cs, S), _batch_spec(Cs, S),
                 _batch_spec(C, S)]
                + [_const_spec(c.shape) for c in consts])
    return pl.pallas_call(
        functools.partial(_stage_cd_kernel, img_w=img_w, use_nin=use_nin,
                          eps=1e-6, inv_gsize=inv_gsize),
        out_shape=jax.ShapeDtypeStruct((B, Cout, S), jnp.float32),
        grid=(B,),
        in_specs=in_specs,
        out_specs=_batch_spec(Cout, S),
        compiler_params=_cparams(1),
    )(hs, x1, x11, x3, *consts)


# ---------------------------------------------------------------------------
# constants / parameter construction
# ---------------------------------------------------------------------------

def _group_ones(c, g):
    """(C, C) 0/1 matrix: 1 where the two channels belong to the same group."""
    cg = c // g
    m = np.zeros((c, c), np.float32)
    for ch in range(c):
        gs = (ch // cg) * cg
        m[ch, gs:gs + cg] = 1.0
    return jnp.asarray(m)


def _tap_masks(h, w):
    """(9, H*W) validity masks for the 3x3 depthwise taps (zero-padding semantics;
    they also zero the roll wraparound lanes)."""
    ys, xs = np.meshgrid(np.arange(h), np.arange(w), indexing="ij")
    m = np.zeros((9, h * w), np.float32)
    for t in range(9):
        dy, dx = t // 3 - 1, t % 3 - 1
        valid = (ys + dy >= 0) & (ys + dy < h) & (xs + dx >= 0) & (xs + dx < w)
        m[t] = valid.reshape(-1).astype(np.float32)
    return jnp.asarray(m)


def _channel_dft_mats(c, cfp):
    """Real matrices implementing rfft / irfft along the channel axis (norm='backward'),
    padded to cfp frequency rows (multiple of 8) so in-kernel slices stay tile-aligned."""
    cf = c // 2 + 1
    k = np.arange(cf)[:, None].astype(np.float64)
    n = np.arange(c)[None, :].astype(np.float64)
    ang = 2.0 * np.pi * k * n / c
    dre = np.cos(ang)                                  # (Cf, C): Xre = dre @ x
    dim = -np.sin(ang)                                 # (Cf, C): Xim = dim @ x
    dftf = np.zeros((2 * cfp, c), np.float64)
    dftf[:cf] = dre
    dftf[cfp:cfp + cf] = dim
    wk = np.full((cf, 1), 2.0)
    wk[0, 0] = 1.0
    if c % 2 == 0:
        wk[-1, 0] = 1.0
    idft = np.zeros((c, 2 * cfp), np.float64)          # x = idft @ [Yre; Yim]
    idft[:, :cf] = (wk / c * np.cos(ang)).T
    idft[:, cfp:cfp + cf] = (-(wk / c) * np.sin(ang)).T
    return jnp.asarray(dftf, jnp.float32), jnp.asarray(idft, jnp.float32)


def init_params(key, in_channels, out_channels=None, num_groups=4):
    C = in_channels
    Cout = C if out_channels is None else out_channels
    Cs = Cout // 2
    Cf = C // 2 + 1
    Cfp = ((Cf + 7) // 8) * 8
    assert C % num_groups == 0 and Cs % num_groups == 0

    keys = iter(jax.random.split(key, 64))

    def dense(cout_, cin_):
        return jax.random.normal(next(keys), (cout_, cin_), jnp.float32) / np.sqrt(cin_)

    def bias(cout_):
        return 0.05 * jax.random.normal(next(keys), (cout_, 1), jnp.float32)

    p = {}
    p["dftf"], p["idft"] = _channel_dft_mats(C, Cfp)

    # ampconv0: Conv1x1(Cf) -> LeakyReLU(0.1) -> Conv1x1(Cf), zero-padded to Cfp so the
    # padded frequency rows stay exactly zero through the whole chain.
    def pad_w(w):
        return jnp.zeros((Cfp, Cfp), jnp.float32).at[:Cf, :Cf].set(w)

    def pad_b(b):
        return jnp.zeros((Cfp, 1), jnp.float32).at[:Cf].set(b)

    p["amp0_w1"], p["amp0_b1"] = pad_w(dense(Cf, Cf)), pad_b(bias(Cf))
    p["amp0_w2"], p["amp0_b2"] = pad_w(dense(Cf, Cf)), pad_b(bias(Cf))

    # norm1 (GroupNorm(4, C), eps=1e-6)
    p["gamma1"] = 1.0 + 0.1 * jax.random.normal(next(keys), (C, 1), jnp.float32)
    p["beta1"] = 0.05 * jax.random.normal(next(keys), (C, 1), jnp.float32)
    p["gavg1"] = _group_ones(C, num_groups)

    # splitconv1 / splitconv2 stacked: rows [0:Cs] -> splitconv1, [Cs:2Cs] -> splitconv2
    p["ws"], p["bs"] = dense(2 * Cs, C), bias(2 * Cs)

    # ampconv / phaconv on the spatial spectrum, stacked block-diagonally (2Cs x 2Cs).
    aw1, ab1, aw2, ab2 = dense(Cs, Cs), bias(Cs), dense(Cs, Cs), bias(Cs)
    pw1, pb1, pw2, pb2 = dense(Cs, Cs), bias(Cs), dense(Cs, Cs), bias(Cs)
    z = jnp.zeros((Cs, Cs), jnp.float32)
    p["b_w1"] = jnp.block([[aw1, z], [z, pw1]])
    p["b_w2"] = jnp.block([[aw2, z], [z, pw2]])
    p["b_b1"] = jnp.concatenate([ab1, pb1], axis=0)
    p["b_b2"] = jnp.concatenate([ab2, pb2], axis=0)

    # conv1 / conv2: DepthwiseSeparableConv(Cs, Cs); depthwise taps stored as (Cs, 9)
    for tag in ("c1", "c2"):
        p[f"{tag}_dw"] = jax.random.normal(next(keys), (Cs, 9), jnp.float32) / 3.0
        p[f"{tag}_dwb"] = bias(Cs)
        p[f"{tag}_pw"], p[f"{tag}_pwb"] = dense(Cs, Cs), bias(Cs)

    # norm2 (GroupNorm(4, Cs), eps=1e-6)
    p["gamma2"] = 1.0 + 0.1 * jax.random.normal(next(keys), (Cs, 1), jnp.float32)
    p["beta2"] = 0.05 * jax.random.normal(next(keys), (Cs, 1), jnp.float32)
    p["gavg2"] = _group_ones(Cs, num_groups)

    # merge conv (1x1, 2*Cs -> Cout), split so the kernel avoids in-kernel concat
    mw = dense(Cout, 2 * Cs)
    p["m_wx"], p["m_wh"], p["m_b"] = mw[:, :Cs], mw[:, Cs:], bias(Cout)

    if C != Cout:
        p["nin_w"], p["nin_b"] = dense(Cout, C), bias(Cout)
    # TODO(synk): conv_shortcut=True (dense 3x3 shortcut conv) is not implemented;
    #             only the default nin_shortcut / identity path is covered.
    return p


# ---------------------------------------------------------------------------
# full forward (glue + 3 fused kernel calls)
# ---------------------------------------------------------------------------

def res_four11_forward(x, params, num_groups=4):
    B, C, H, W = x.shape
    HW = H * W
    Wf = W // 2 + 1

    # NCHW is already channels-first: flattening the spatial axes needs no transpose.
    x3 = x.reshape(B, C, HW)

    # stage A: channel-freq branch + norm1 + split convs (+ swish).
    x1, hs = stage_a(x3, params, num_groups)                    # each (B, Cs, HW)
    Cs = x1.shape[1]

    # spatial frequency branch on x1 (2-D FFT + angle stay in plain JAX; layout is
    # already channels-first so there are no transposes around it).
    Xf = jnp.fft.rfft2(x1.reshape(B, Cs, H, W))                 # (B, Cs, H, Wf)
    amp = jnp.abs(Xf)
    pha = jnp.angle(Xf)
    ap = jnp.concatenate([amp, pha], axis=1).reshape(B, 2 * Cs, H * Wf).astype(jnp.float32)
    re_im = stage_b(ap, params)                                 # (B, 2Cs, H*Wf)
    Xn = (re_im[:, :Cs] + 1j * re_im[:, Cs:]).reshape(B, Cs, H, Wf)
    x11 = jnp.fft.irfft2(Xn, s=(H, W)).reshape(B, Cs, HW).astype(jnp.float32)

    # stage C+D: conv path, gating, merge and residual, all fused in one call.
    masks = _tap_masks(H, W)
    out = stage_cd(hs, x1, x11, x3, masks, params, num_groups, W)
    Cout = out.shape[1]
    return out.reshape(B, Cout, H, W)                           # NCHW


# ---------------------------------------------------------------------------
# main
# ---------------------------------------------------------------------------

if __name__ == "__main__":
    # in_channels = out_channels = 8 (divisible by the 4 groups; Cs = 4 also divisible).
    B, C, H, W = 2, 8, 16, 16
    key = jax.random.PRNGKey(0)
    kx, kp = jax.random.split(key)
    x = jax.random.normal(kx, (B, C, H, W), jnp.float32)
    params = init_params(kp, in_channels=C, out_channels=C)

    fwd = jax.jit(res_four11_forward)
    out = jax.block_until_ready(fwd(x, params))

    assert out.shape == (B, C, H, W), out.shape
    assert bool(jnp.all(jnp.isfinite(out)))
    print("KERNEL_OK")
</pallas_src>

<mosaic_0001>
module attributes {stable_mosaic.version = 11 : i64} {
  func.func @_stage_a_kernel(%arg0: i32, %arg1: memref<1x8x256xf32, #tpu.memory_space<vmem>>, %arg2: memref<16x8xf32, #tpu.memory_space<vmem>>, %arg3: memref<8x8xf32, #tpu.memory_space<vmem>>, %arg4: memref<8x1xf32, #tpu.memory_space<vmem>>, %arg5: memref<8x8xf32, #tpu.memory_space<vmem>>, %arg6: memref<8x1xf32, #tpu.memory_space<vmem>>, %arg7: memref<8x16xf32, #tpu.memory_space<vmem>>, %arg8: memref<8x8xf32, #tpu.memory_space<vmem>>, %arg9: memref<8x1xf32, #tpu.memory_space<vmem>>, %arg10: memref<8x1xf32, #tpu.memory_space<vmem>>, %arg11: memref<8x8xf32, #tpu.memory_space<vmem>>, %arg12: memref<8x1xf32, #tpu.memory_space<vmem>>, %arg13: memref<1x4x256xf32, #tpu.memory_space<vmem>>, %arg14: memref<1x4x256xf32, #tpu.memory_space<vmem>>) attributes {dimension_semantics = [#tpu.dimension_semantics<parallel>], iteration_bounds = array<i64: 2>, scalar_prefetch = 0 : i64, scratch_operands = 0 : i64, tpu.core_type = #tpu.core_type<tc>, window_params = [{transform_indices = @transform_0, window_bounds = array<i64: 1, 8, 256>}, {pipeline_mode = #tpu.pipeline_mode<synchronous>, transform_indices = @transform_1, window_bounds = array<i64: 16, 8>}, {pipeline_mode = #tpu.pipeline_mode<synchronous>, transform_indices = @transform_2, window_bounds = array<i64: 8, 8>}, {pipeline_mode = #tpu.pipeline_mode<synchronous>, transform_indices = @transform_3, window_bounds = array<i64: 8, 1>}, {pipeline_mode = #tpu.pipeline_mode<synchronous>, transform_indices = @transform_4, window_bounds = array<i64: 8, 8>}, {pipeline_mode = #tpu.pipeline_mode<synchronous>, transform_indices = @transform_5, window_bounds = array<i64: 8, 1>}, {pipeline_mode = #tpu.pipeline_mode<synchronous>, transform_indices = @transform_6, window_bounds = array<i64: 8, 16>}, {pipeline_mode = #tpu.pipeline_mode<synchronous>, transform_indices = @transform_7, window_bounds = array<i64: 8, 8>}, {pipeline_mode = #tpu.pipeline_mode<synchronous>, transform_indices = @transform_8, window_bounds = array<i64: 8, 1>}, {pipeline_mode = #tpu.pipeline_mode<synchronous>, transform_indices = @transform_9, window_bounds = array<i64: 8, 1>}, {pipeline_mode = #tpu.pipeline_mode<synchronous>, transform_indices = @transform_10, window_bounds = array<i64: 8, 8>}, {pipeline_mode = #tpu.pipeline_mode<synchronous>, transform_indices = @transform_11, window_bounds = array<i64: 8, 1>}, {transform_indices = @transform_12, window_bounds = array<i64: 1, 4, 256>}, {transform_indices = @transform_13, window_bounds = array<i64: 1, 4, 256>}]} {
    %c0 = arith.constant 0 : index
    %c0_0 = arith.constant 0 : index
    %c0_1 = arith.constant 0 : index
    %0 = vector.load %arg1[%c0, %c0_0, %c0_1] : memref<1x8x256xf32, #tpu.memory_space<vmem>>, vector<1x8x256xf32>
    %1 = vector.shape_cast %0 : vector<1x8x256xf32> to vector<8x256xf32>
    %c0_2 = arith.constant 0 : index
    %c0_3 = arith.constant 0 : index
    %2 = vector.load %arg2[%c0_2, %c0_3] : memref<16x8xf32, #tpu.memory_space<vmem>>, vector<16x8xf32>
    %cst = arith.constant dense<0.000000e+00> : vector<16x256xf32>
    %3 = tpu.matmul %2, %1, %cst {dimension_numbers = #tpu.dot_dimension_numbers<[1], [0], [0], [1], [0, 0, 1, 1], [], []>} : vector<16x8xf32>, vector<8x256xf32>, vector<16x256xf32> -> vector<16x256xf32>
    %4 = vector.extract_strided_slice %3 {offsets = [0, 0], sizes = [8, 256], strides = [1, 1]} : vector<16x256xf32> to vector<8x256xf32>
    %5 = vector.extract_strided_slice %3 {offsets = [8, 0], sizes = [8, 256], strides = [1, 1]} : vector<16x256xf32> to vector<8x256xf32>
    %6 = arith.mulf %4, %4 : vector<8x256xf32>
    %7 = arith.mulf %5, %5 : vector<8x256xf32>
    %8 = arith.addf %6, %7 : vector<8x256xf32>
    %9 = math.sqrt %8 : vector<8x256xf32>
    %c0_4 = arith.constant 0 : index
    %c0_5 = arith.constant 0 : index
    %10 = vector.load %arg3[%c0_4, %c0_5] : memref<8x8xf32, #tpu.memory_space<vmem>>, vector<8x8xf32>
    %cst_6 = arith.constant dense<0.000000e+00> : vector<8x256xf32>
    %11 = tpu.matmul %10, %9, %cst_6 {dimension_numbers = #tpu.dot_dimension_numbers<[1], [0], [0], [1], [0, 0, 1, 1], [], []>} : vector<8x8xf32>, vector<8x256xf32>, vector<8x256xf32> -> vector<8x256xf32>
    %c0_7 = arith.constant 0 : index
    %c0_8 = arith.constant 0 : index
    %12 = vector.load %arg4[%c0_7, %c0_8] : memref<8x1xf32, #tpu.memory_space<vmem>>, vector<8x1xf32>
    %13 = vector.broadcast %12 : vector<8x1xf32> to vector<8x256xf32>
    %14 = arith.addf %11, %13 : vector<8x256xf32>
    %cst_9 = arith.constant 0.000000e+00 : f32
    %15 = vector.broadcast %cst_9 : f32 to vector<8x256xf32>
    %16 = arith.cmpf oge, %14, %15 : vector<8x256xf32>
    %cst_10 = arith.constant 1.000000e-01 : f32
    %17 = vector.broadcast %cst_10 : f32 to vector<8x256xf32>
    %18 = arith.mulf %17, %14 : vector<8x256xf32>
    %19 = arith.select %16, %14, %18 : vector<8x256xi1>, vector<8x256xf32>
    %c0_11 = arith.constant 0 : index
    %c0_12 = arith.constant 0 : index
    %20 = vector.load %arg5[%c0_11, %c0_12] : memref<8x8xf32, #tpu.memory_space<vmem>>, vector<8x8xf32>
    %cst_13 = arith.constant dense<0.000000e+00> : vector<8x256xf32>
    %21 = tpu.matmul %20, %19, %cst_13 {dimension_numbers = #tpu.dot_dimension_numbers<[1], [0], [0], [1], [0, 0, 1, 1], [], []>} : vector<8x8xf32>, vector<8x256xf32>, vector<8x256xf32> -> vector<8x256xf32>
    %c0_14 = arith.constant 0 : index
    %c0_15 = arith.constant 0 : index
    %22 = vector.load %arg6[%c0_14, %c0_15] : memref<8x1xf32, #tpu.memory_space<vmem>>, vector<8x1xf32>
    %23 = vector.broadcast %22 : vector<8x1xf32> to vector<8x256xf32>
    %24 = arith.addf %21, %23 : vector<8x256xf32>
    %cst_16 = arith.constant 0.000000e+00 : f32
    %25 = vector.broadcast %cst_16 : f32 to vector<8x256xf32>
    %26 = arith.cmpf ogt, %9, %25 : vector<8x256xf32>
    %cst_17 = arith.constant 1.000000e+00 : f32
    %27 = vector.broadcast %cst_17 : f32 to vector<8x256xf32>
    %28 = arith.select %26, %9, %27 : vector<8x256xi1>, vector<8x256xf32>
    %29 = arith.divf %24, %28 : vector<8x256xf32>
    %30 = arith.mulf %29, %4 : vector<8x256xf32>
    %31 = arith.select %26, %30, %24 : vector<8x256xi1>, vector<8x256xf32>
    %32 = arith.mulf %29, %5 : vector<8x256xf32>
    %cst_18 = arith.constant 0.000000e+00 : f32
    %33 = vector.broadcast %cst_18 : f32 to vector<8x256xf32>
    %34 = arith.select %26, %32, %33 : vector<8x256xi1>, vector<8x256xf32>
    %35 = tpu.concatenate %31, %34 in 0 : vector<8x256xf32>, vector<8x256xf32> -> vector<16x256xf32>
    %c0_19 = arith.constant 0 : index
    %c0_20 = arith.constant 0 : index
    %36 = vector.load %arg7[%c0_19, %c0_20] : memref<8x16xf32, #tpu.memory_space<vmem>>, vector<8x16xf32>
    %cst_21 = arith.constant dense<0.000000e+00> : vector<8x256xf32>
    %37 = tpu.matmul %36, %35, %cst_21 {dimension_numbers = #tpu.dot_dimension_numbers<[1], [0], [0], [1], [0, 0, 1, 1], [], []>} : vector<8x16xf32>, vector<16x256xf32>, vector<8x256xf32> -> vector<8x256xf32>
    %38 = arith.addf %1, %37 : vector<8x256xf32>
    %cst_22 = arith.constant dense<0.000000e+00> : vector<8xf32>
    %39 = vector.multi_reduction <add>, %38, %cst_22 [1] : vector<8x256xf32> to vector<8xf32>
    %40 = vector.shape_cast %39 : vector<8xf32> to vector<8x1xf32>
    %c0_23 = arith.constant 0 : index
    %c0_24 = arith.constant 0 : index
    %41 = vector.load %arg8[%c0_23, %c0_24] : memref<8x8xf32, #tpu.memory_space<vmem>>, vector<8x8xf32>
    %cst_25 = arith.constant dense<0.000000e+00> : vector<8x1xf32>
    %42 = tpu.matmul %41, %40, %cst_25 {dimension_numbers = #tpu.dot_dimension_numbers<[1], [0], [0], [1], [0, 0, 1, 1], [], []>} : vector<8x8xf32>, vector<8x1xf32>, vector<8x1xf32> -> vector<8x1xf32>
    %cst_26 = arith.constant 0.001953125 : f32
    %43 = vector.broadcast %cst_26 : f32 to vector<8x1xf32>
    %44 = arith.mulf %42, %43 : vector<8x1xf32>
    %45 = vector.broadcast %44 : vector<8x1xf32> to vector<8x256xf32>
    %46 = arith.subf %38, %45 : vector<8x256xf32>
    %47 = arith.mulf %46, %46 : vector<8x256xf32>
    %cst_27 = arith.constant dense<0.000000e+00> : vector<8xf32>
    %48 = vector.multi_reduction <add>, %47, %cst_27 [1] : vector<8x256xf32> to vector<8xf32>
    %49 = vector.shape_cast %48 : vector<8xf32> to vector<8x1xf32>
    %c0_28 = arith.constant 0 : index
    %c0_29 = arith.constant 0 : index
    %50 = vector.load %arg8[%c0_28, %c0_29] : memref<8x8xf32, #tpu.memory_space<vmem>>, vector<8x8xf32>
    %cst_30 = arith.constant dense<0.000000e+00> : vector<8x1xf32>
    %51 = tpu.matmul %50, %49, %cst_30 {dimension_numbers = #tpu.dot_dimension_numbers<[1], [0], [0], [1], [0, 0, 1, 1], [], []>} : vector<8x8xf32>, vector<8x1xf32>, vector<8x1xf32> -> vector<8x1xf32>
    %cst_31 = arith.constant 0.001953125 : f32
    %52 = vector.broadcast %cst_31 : f32 to vector<8x1xf32>
    %53 = arith.mulf %51, %52 : vector<8x1xf32>
    %cst_32 = arith.constant 9.99999997E-7 : f32
    %54 = vector.broadcast %cst_32 : f32 to vector<8x1xf32>
    %55 = arith.addf %53, %54 : vector<8x1xf32>
    %56 = math.rsqrt %55 : vector<8x1xf32>
    %57 = vector.broadcast %56 : vector<8x1xf32> to vector<8x256xf32>
    %58 = arith.mulf %46, %57 : vector<8x256xf32>
    %c0_33 = arith.constant 0 : index
    %c0_34 = arith.constant 0 : index
    %59 = vector.load %arg9[%c0_33, %c0_34] : memref<8x1xf32, #tpu.memory_space<vmem>>, vector<8x1xf32>
    %60 = vector.broadcast %59 : vector<8x1xf32> to vector<8x256xf32>
    %61 = arith.mulf %58, %60 : vector<8x256xf32>
    %c0_35 = arith.constant 0 : index
    %c0_36 = arith.constant 0 : index
    %62 = vector.load %arg10[%c0_35, %c0_36] : memref<8x1xf32, #tpu.memory_space<vmem>>, vector<8x1xf32>
    %63 = vector.broadcast %62 : vector<8x1xf32> to vector<8x256xf32>
    %64 = arith.addf %61, %63 : vector<8x256xf32>
    %c0_37 = arith.constant 0 : index
    %c0_38 = arith.constant 0 : index
    %65 = vector.load %arg11[%c0_37, %c0_38] : memref<8x8xf32, #tpu.memory_space<vmem>>, vector<8x8xf32>
    %cst_39 = arith.constant dense<0.000000e+00> : vector<8x256xf32>
    %66 = tpu.matmul %65, %64, %cst_39 {dimension_numbers = #tpu.dot_dimension_numbers<[1], [0], [0], [1], [0, 0, 1, 1], [], []>} : vector<8x8xf32>, vector<8x256xf32>, vector<8x256xf32> -> vector<8x256xf32>
    %c0_40 = arith.constant 0 : index
    %c0_41 = arith.constant 0 : index
    %67 = vector.load %arg12[%c0_40, %c0_41] : memref<8x1xf32, #tpu.memory_space<vmem>>, vector<8x1xf32>
    %68 = vector.broadcast %67 : vector<8x1xf32> to vector<8x256xf32>
    %69 = arith.addf %66, %68 : vector<8x256xf32>
    %70 = vector.extract_strided_slice %69 {offsets = [0, 0], sizes = [4, 256], strides = [1, 1]} : vector<8x256xf32> to vector<4x256xf32>
    %c0_42 = arith.constant 0 : index
    %c0_43 = arith.constant 0 : index
    %c0_44 = arith.constant 0 : index
    %71 = vector.load %arg13[%c0_42, %c0_43, %c0_44] : memref<1x4x256xf32, #tpu.memory_space<vmem>>, vector<1x4x256xf32>
    %72 = vector.shape_cast %71 : vector<1x4x256xf32> to vector<4x256xf32>
    %73 = vector.shape_cast %70 : vector<4x256xf32> to vector<1x4x256xf32>
    tpu.vector_store %arg13[%c0_42, %c0_43, %c0_44], %73 {strides = array<i32>} : memref<1x4x256xf32, #tpu.memory_space<vmem>>, vector<1x4x256xf32>,
    %74 = vector.extract_strided_slice %69 {offsets = [4, 0], sizes = [4, 256], strides = [1, 1]} : vector<8x256xf32> to vector<4x256xf32>
    %75 = arith.negf %74 : vector<4x256xf32>
    %76 = math.exp %75 : vector<4x256xf32>
    %cst_45 = arith.constant 1.000000e+00 : f32
    %77 = vector.broadcast %cst_45 : f32 to vector<4x256xf32>
    %78 = arith.addf %77, %76 : vector<4x256xf32>
    %79 = arith.divf %77, %78 : vector<4x256xf32>
    %80 = arith.mulf %74, %79 : vector<4x256xf32>
    %c0_46 = arith.constant 0 : index
    %c0_47 = arith.constant 0 : index
    %c0_48 = arith.constant 0 : index
    %81 = vector.load %arg14[%c0_46, %c0_47, %c0_48] : memref<1x4x256xf32, #tpu.memory_space<vmem>>, vector<1x4x256xf32>
    %82 = vector.shape_cast %81 : vector<1x4x256xf32> to vector<4x256xf32>
    %83 = vector.shape_cast %80 : vector<4x256xf32> to vector<1x4x256xf32>
    tpu.vector_store %arg14[%c0_46, %c0_47, %c0_48], %83 {strides = array<i32>} : memref<1x4x256xf32, #tpu.memory_space<vmem>>, vector<1x4x256xf32>,
    return
  }
  func.func @transform_0(%arg0: i32) -> (i32, i32, i32) {
    %c0_i32 = arith.constant 0 : i32
    %c0_i32_0 = arith.constant 0 : i32
    %c0_i32_1 = arith.constant 0 : i32
    return %arg0, %c0_i32, %c0_i32_0 : i32, i32, i32
  }
  func.func @transform_1(%arg0: i32) -> (i32, i32) {
    %c0_i32 = arith.constant 0 : i32
    %c0_i32_0 = arith.constant 0 : i32
    %c0_i32_1 = arith.constant 0 : i32
    return %c0_i32, %c0_i32_0 : i32, i32
  }
  func.func @transform_2(%arg0: i32) -> (i32, i32) {
    %c0_i32 = arith.constant 0 : i32
    %c0_i32_0 = arith.constant 0 : i32
    %c0_i32_1 = arith.constant 0 : i32
    return %c0_i32, %c0_i32_0 : i32, i32
  }
  func.func @transform_3(%arg0: i32) -> (i32, i32) {
    %c0_i32 = arith.constant 0 : i32
    %c0_i32_0 = arith.constant 0 : i32
    %c0_i32_1 = arith.constant 0 : i32
    return %c0_i32, %c0_i32_0 : i32, i32
  }
  func.func @transform_4(%arg0: i32) -> (i32, i32) {
    %c0_i32 = arith.constant 0 : i32
    %c0_i32_0 = arith.constant 0 : i32
    %c0_i32_1 = arith.constant 0 : i32
    return %c0_i32, %c0_i32_0 : i32, i32
  }
  func.func @transform_5(%arg0: i32) -> (i32, i32) {
    %c0_i32 = arith.constant 0 : i32
    %c0_i32_0 = arith.constant 0 : i32
    %c0_i32_1 = arith.constant 0 : i32
    return %c0_i32, %c0_i32_0 : i32, i32
  }
  func.func @transform_6(%arg0: i32) -> (i32, i32) {
    %c0_i32 = arith.constant 0 : i32
    %c0_i32_0 = arith.constant 0 : i32
    %c0_i32_1 = arith.constant 0 : i32
    return %c0_i32, %c0_i32_0 : i32, i32
  }
  func.func @transform_7(%arg0: i32) -> (i32, i32) {
    %c0_i32 = arith.constant 0 : i32
    %c0_i32_0 = arith.constant 0 : i32
    %c0_i32_1 = arith.constant 0 : i32
    return %c0_i32, %c0_i32_0 : i32, i32
  }
  func.func @transform_8(%arg0: i32) -> (i32, i32) {
    %c0_i32 = arith.constant 0 : i32
    %c0_i32_0 = arith.constant 0 : i32
    %c0_i32_1 = arith.constant 0 : i32
    return %c0_i32, %c0_i32_0 : i32, i32
  }
  func.func @transform_9(%arg0: i32) -> (i32, i32) {
    %c0_i32 = arith.constant 0 : i32
    %c0_i32_0 = arith.constant 0 : i32
    %c0_i32_1 = arith.constant 0 : i32
    return %c0_i32, %c0_i32_0 : i32, i32
  }
  func.func @transform_10(%arg0: i32) -> (i32, i32) {
    %c0_i32 = arith.constant 0 : i32
    %c0_i32_0 = arith.constant 0 : i32
    %c0_i32_1 = arith.constant 0 : i32
    return %c0_i32, %c0_i32_0 : i32, i32
  }
  func.func @transform_11(%arg0: i32) -> (i32, i32) {
    %c0_i32 = arith.constant 0 : i32
    %c0_i32_0 = arith.constant 0 : i32
    %c0_i32_1 = arith.constant 0 : i32
    return %c0_i32, %c0_i32_0 : i32, i32
  }
  func.func @transform_12(%arg0: i32) -> (i32, i32, i32) {
    %c0_i32 = arith.constant 0 : i32
    %c0_i32_0 = arith.constant 0 : i32
    %c0_i32_1 = arith.constant 0 : i32
    return %arg0, %c0_i32, %c0_i32_0 : i32, i32, i32
  }
  func.func @transform_13(%arg0: i32) -> (i32, i32, i32) {
    %c0_i32 = arith.constant 0 : i32
    %c0_i32_0 = arith.constant 0 : i32
    %c0_i32_1 = arith.constant 0 : i32
    return %arg0, %c0_i32, %c0_i32_0 : i32, i32, i32
  }
}

module attributes {stable_mosaic.version = 11 : i64} {
  func.func @_stage_b_kernel(%arg0: i32, %arg1: i32, %arg2: memref<1x8x144xf32, #tpu.memory_space<vmem>>, %arg3: memref<8x8xf32, #tpu.memory_space<vmem>>, %arg4: memref<8x1xf32, #tpu.memory_space<vmem>>, %arg5: memref<8x8xf32, #tpu.memory_space<vmem>>, %arg6: memref<8x1xf32, #tpu.memory_space<vmem>>, %arg7: memref<1x8x144xf32, #tpu.memory_space<vmem>>) attributes {dimension_semantics = [#tpu.dimension_semantics<parallel>, #tpu.dimension_semantics<parallel>], iteration_bounds = array<i64: 2, 1>, scalar_prefetch = 0 : i64, scratch_operands = 0 : i64, tpu.core_type = #tpu.core_type<tc>, window_params = [{transform_indices = @transform_0, window_bounds = array<i64: 1, 8, 144>}, {pipeline_mode = #tpu.pipeline_mode<synchronous>, transform_indices = @transform_1, window_bounds = array<i64: 8, 8>}, {pipeline_mode = #tpu.pipeline_mode<synchronous>, transform_indices = @transform_2, window_bounds = array<i64: 8, 1>}, {pipeline_mode = #tpu.pipeline_mode<synchronous>, transform_indices = @transform_3, window_bounds = array<i64: 8, 8>}, {pipeline_mode = #tpu.pipeline_mode<synchronous>, transform_indices = @transform_4, window_bounds = array<i64: 8, 1>}, {transform_indices = @transform_5, window_bounds = array<i64: 1, 8, 144>}]} {
    %c0 = arith.constant 0 : index
    %c0_0 = arith.constant 0 : index
    %c0_1 = arith.constant 0 : index
    %0 = vector.load %arg2[%c0, %c0_0, %c0_1] : memref<1x8x144xf32, #tpu.memory_space<vmem>>, vector<1x8x144xf32>
    %1 = vector.shape_cast %0 : vector<1x8x144xf32> to vector<8x144xf32>
    %c0_2 = arith.constant 0 : index
    %c0_3 = arith.constant 0 : index
    %2 = vector.load %arg3[%c0_2, %c0_3] : memref<8x8xf32, #tpu.memory_space<vmem>>, vector<8x8xf32>
    %cst = arith.constant dense<0.000000e+00> : vector<8x144xf32>
    %3 = tpu.matmul %2, %1, %cst {dimension_numbers = #tpu.dot_dimension_numbers<[1], [0], [0], [1], [0, 0, 1, 1], [], []>} : vector<8x8xf32>, vector<8x144xf32>, vector<8x144xf32> -> vector<8x144xf32>
    %c0_4 = arith.constant 0 : index
    %c0_5 = arith.constant 0 : index
    %4 = vector.load %arg4[%c0_4, %c0_5] : memref<8x1xf32, #tpu.memory_space<vmem>>, vector<8x1xf32>
    %5 = vector.broadcast %4 : vector<8x1xf32> to vector<8x144xf32>
    %6 = arith.addf %3, %5 : vector<8x144xf32>
    %cst_6 = arith.constant 0.000000e+00 : f32
    %7 = vector.broadcast %cst_6 : f32 to vector<8x144xf32>
    %8 = arith.cmpf oge, %6, %7 : vector<8x144xf32>
    %cst_7 = arith.constant 1.000000e-01 : f32
    %9 = vector.broadcast %cst_7 : f32 to vector<8x144xf32>
    %10 = arith.mulf %9, %6 : vector<8x144xf32>
    %11 = arith.select %8, %6, %10 : vector<8x144xi1>, vector<8x144xf32>
    %c0_8 = arith.constant 0 : index
    %c0_9 = arith.constant 0 : index
    %12 = vector.load %arg5[%c0_8, %c0_9] : memref<8x8xf32, #tpu.memory_space<vmem>>, vector<8x8xf32>
    %cst_10 = arith.constant dense<0.000000e+00> : vector<8x144xf32>
    %13 = tpu.matmul %12, %11, %cst_10 {dimension_numbers = #tpu.dot_dimension_numbers<[1], [0], [0], [1], [0, 0, 1, 1], [], []>} : vector<8x8xf32>, vector<8x144xf32>, vector<8x144xf32> -> vector<8x144xf32>
    %c0_11 = arith.constant 0 : index
    %c0_12 = arith.constant 0 : index
    %14 = vector.load %arg6[%c0_11, %c0_12] : memref<8x1xf32, #tpu.memory_space<vmem>>, vector<8x1xf32>
    %15 = vector.broadcast %14 : vector<8x1xf32> to vector<8x144xf32>
    %16 = arith.addf %13, %15 : vector<8x144xf32>
    %17 = vector.extract_strided_slice %16 {offsets = [0, 0], sizes = [4, 144], strides = [1, 1]} : vector<8x144xf32> to vector<4x144xf32>
    %18 = vector.extract_strided_slice %16 {offsets = [4, 0], sizes = [4, 144], strides = [1, 1]} : vector<8x144xf32> to vector<4x144xf32>
    %19 = math.cos %18 : vector<4x144xf32>
    %20 = arith.mulf %17, %19 : vector<4x144xf32>
    %21 = math.sin %18 : vector<4x144xf32>
    %22 = arith.mulf %17, %21 : vector<4x144xf32>
    %23 = tpu.concatenate %20, %22 in 0 : vector<4x144xf32>, vector<4x144xf32> -> vector<8x144xf32>
    %c0_13 = arith.constant 0 : index
    %c0_14 = arith.constant 0 : index
    %c0_15 = arith.constant 0 : index
    %24 = vector.load %arg7[%c0_13, %c0_14, %c0_15] : memref<1x8x144xf32, #tpu.memory_space<vmem>>, vector<1x8x144xf32>
    %25 = vector.shape_cast %24 : vector<1x8x144xf32> to vector<8x144xf32>
    %26 = vector.shape_cast %23 : vector<8x144xf32> to vector<1x8x144xf32>
    tpu.vector_store %arg7[%c0_13, %c0_14, %c0_15], %26 {strides = array<i32>} : memref<1x8x144xf32, #tpu.memory_space<vmem>>, vector<1x8x144xf32>,
    return
  }
  func.func @transform_0(%arg0: i32, %arg1: i32) -> (i32, i32, i32) {
    %c0_i32 = arith.constant 0 : i32
    %c0_i32_0 = arith.constant 0 : i32
    return %arg0, %c0_i32, %arg1 : i32, i32, i32
  }
  func.func @transform_1(%arg0: i32, %arg1: i32) -> (i32, i32) {
    %c0_i32 = arith.constant 0 : i32
    %c0_i32_0 = arith.constant 0 : i32
    %c0_i32_1 = arith.constant 0 : i32
    return %c0_i32, %c0_i32_0 : i32, i32
  }
  func.func @transform_2(%arg0: i32, %arg1: i32) -> (i32, i32) {
    %c0_i32 = arith.constant 0 : i32
    %c0_i32_0 = arith.constant 0 : i32
    %c0_i32_1 = arith.constant 0 : i32
    return %c0_i32, %c0_i32_0 : i32, i32
  }
  func.func @transform_3(%arg0: i32, %arg1: i32) -> (i32, i32) {
    %c0_i32 = arith.constant 0 : i32
    %c0_i32_0 = arith.constant 0 : i32
    %c0_i32_1 = arith.constant 0 : i32
    return %c0_i32, %c0_i32_0 : i32, i32
  }
  func.func @transform_4(%arg0: i32, %arg1: i32) -> (i32, i32) {
    %c0_i32 = arith.constant 0 : i32
    %c0_i32_0 = arith.constant 0 : i32
    %c0_i32_1 = arith.constant 0 : i32
    return %c0_i32, %c0_i32_0 : i32, i32
  }
  func.func @transform_5(%arg0: i32, %arg1: i32) -> (i32, i32, i32) {
    %c0_i32 = arith.constant 0 : i32
    %c0_i32_0 = arith.constant 0 : i32
    return %arg0, %c0_i32, %arg1 : i32, i32, i32
  }
}

module attributes {stable_mosaic.version = 11 : i64} {
  func.func @_stage_cd_kernel(%arg0: i32, %arg1: memref<1x4x256xf32, #tpu.memory_space<vmem>>, %arg2: memref<1x4x256xf32, #tpu.memory_space<vmem>>, %arg3: memref<1x4x256xf32, #tpu.memory_space<vmem>>, %arg4: memref<1x8x256xf32, #tpu.memory_space<vmem>>, %arg5: memref<9x256xf32, #tpu.memory_space<vmem>>, %arg6: memref<4x9xf32, #tpu.memory_space<vmem>>, %arg7: memref<4x1xf32, #tpu.memory_space<vmem>>, %arg8: memref<4x4xf32, #tpu.memory_space<vmem>>, %arg9: memref<4x1xf32, #tpu.memory_space<vmem>>, %arg10: memref<4x4xf32, #tpu.memory_space<vmem>>, %arg11: memref<4x1xf32, #tpu.memory_space<vmem>>, %arg12: memref<4x1xf32, #tpu.memory_space<vmem>>, %arg13: memref<4x9xf32, #tpu.memory_space<vmem>>, %arg14: memref<4x1xf32, #tpu.memory_space<vmem>>, %arg15: memref<4x4xf32, #tpu.memory_space<vmem>>, %arg16: memref<4x1xf32, #tpu.memory_space<vmem>>, %arg17: memref<8x4xf32, #tpu.memory_space<vmem>>, %arg18: memref<8x4xf32, #tpu.memory_space<vmem>>, %arg19: memref<8x1xf32, #tpu.memory_space<vmem>>, %arg20: memref<1x8x256xf32, #tpu.memory_space<vmem>>) attributes {dimension_semantics = [#tpu.dimension_semantics<parallel>], iteration_bounds = array<i64: 2>, scalar_prefetch = 0 : i64, scratch_operands = 0 : i64, tpu.core_type = #tpu.core_type<tc>, window_params = [{transform_indices = @transform_0, window_bounds = array<i64: 1, 4, 256>}, {transform_indices = @transform_1, window_bounds = array<i64: 1, 4, 256>}, {transform_indices = @transform_2, window_bounds = array<i64: 1, 4, 256>}, {transform_indices = @transform_3, window_bounds = array<i64: 1, 8, 256>}, {pipeline_mode = #tpu.pipeline_mode<synchronous>, transform_indices = @transform_4, window_bounds = array<i64: 9, 256>}, {pipeline_mode = #tpu.pipeline_mode<synchronous>, transform_indices = @transform_5, window_bounds = array<i64: 4, 9>}, {pipeline_mode = #tpu.pipeline_mode<synchronous>, transform_indices = @transform_6, window_bounds = array<i64: 4, 1>}, {pipeline_mode = #tpu.pipeline_mode<synchronous>, transform_indices = @transform_7, window_bounds = array<i64: 4, 4>}, {pipeline_mode = #tpu.pipeline_mode<synchronous>, transform_indices = @transform_8, window_bounds = array<i64: 4, 1>}, {pipeline_mode = #tpu.pipeline_mode<synchronous>, transform_indices = @transform_9, window_bounds = array<i64: 4, 4>}, {pipeline_mode = #tpu.pipeline_mode<synchronous>, transform_indices = @transform_10, window_bounds = array<i64: 4, 1>}, {pipeline_mode = #tpu.pipeline_mode<synchronous>, transform_indices = @transform_11, window_bounds = array<i64: 4, 1>}, {pipeline_mode = #tpu.pipeline_mode<synchronous>, transform_indices = @transform_12, window_bounds = array<i64: 4, 9>}, {pipeline_mode = #tpu.pipeline_mode<synchronous>, transform_indices = @transform_13, window_bounds = array<i64: 4, 1>}, {pipeline_mode = #tpu.pipeline_mode<synchronous>, transform_indices = @transform_14, window_bounds = array<i64: 4, 4>}, {pipeline_mode = #tpu.pipeline_mode<synchronous>, transform_indices = @transform_15, window_bounds = array<i64: 4, 1>}, {pipeline_mode = #tpu.pipeline_mode<synchronous>, transform_indices = @transform_16, window_bounds = array<i64: 8, 4>}, {pipeline_mode = #tpu.pipeline_mode<synchronous>, transform_indices = @transform_17, window_bounds = array<i64: 8, 4>}, {pipeline_mode = #tpu.pipeline_mode<synchronous>, transform_indices = @transform_18, window_bounds = array<i64: 8, 1>}, {transform_indices = @transform_19, window_bounds = array<i64: 1, 8, 256>}]} {
    %c0 = arith.constant 0 : index
    %c0_0 = arith.constant 0 : index
    %c0_1 = arith.constant 0 : index
    %0 = vector.load %arg1[%c0, %c0_0, %c0_1] : memref<1x4x256xf32, #tpu.memory_space<vmem>>, vector<1x4x256xf32>
    %1 = vector.shape_cast %0 : vector<1x4x256xf32> to vector<4x256xf32>
    %c0_2 = arith.constant 0 : index
    %c0_3 = arith.constant 0 : index
    %2 = vector.load %arg5[%c0_2, %c0_3] : memref<9x256xf32, #tpu.memory_space<vmem>>, vector<9x256xf32>
    %c0_4 = arith.constant 0 : index
    %c0_5 = arith.constant 0 : index
    %3 = vector.load %arg6[%c0_4, %c0_5] : memref<4x9xf32, #tpu.memory_space<vmem>>, vector<4x9xf32>
    %4 = vector.extract_strided_slice %3 {offsets = [0, 4], sizes = [4, 1], strides = [1, 1]} : vector<4x9xf32> to vector<4x1xf32>
    %5 = vector.broadcast %4 : vector<4x1xf32> to vector<4x256xf32>
    %6 = arith.mulf %5, %1 : vector<4x256xf32>
    %c17_i32 = arith.constant 17 : i32
    %7 = tpu.dynamic_rotate %1 by %c17_i32 dim 1 : vector<4x256xf32>, i32 -> vector<4x256xf32>
    %8 = vector.extract_strided_slice %3 {offsets = [0, 0], sizes = [4, 1], strides = [1, 1]} : vector<4x9xf32> to vector<4x1xf32>
    %9 = vector.extract_strided_slice %2 {offsets = [0, 0], sizes = [1, 256], strides = [1, 1]} : vector<9x256xf32> to vector<1x256xf32>
    %10 = vector.broadcast %9 : vector<1x256xf32> to vector<4x256xf32>
    %11 = arith.mulf %10, %7 : vector<4x256xf32>
    %12 = vector.broadcast %8 : vector<4x1xf32> to vector<4x256xf32>
    %13 = arith.mulf %12, %11 : vector<4x256xf32>
    %14 = arith.addf %6, %13 : vector<4x256xf32>
    %c16_i32 = arith.constant 16 : i32
    %15 = tpu.dynamic_rotate %1 by %c16_i32 dim 1 : vector<4x256xf32>, i32 -> vector<4x256xf32>
    %16 = vector.extract_strided_slice %3 {offsets = [0, 1], sizes = [4, 1], strides = [1, 1]} : vector<4x9xf32> to vector<4x1xf32>
    %17 = vector.extract_strided_slice %2 {offsets = [1, 0], sizes = [1, 256], strides = [1, 1]} : vector<9x256xf32> to vector<1x256xf32>
    %18 = vector.broadcast %17 : vector<1x256xf32> to vector<4x256xf32>
    %19 = arith.mulf %18, %15 : vector<4x256xf32>
    %20 = vector.broadcast %16 : vector<4x1xf32> to vector<4x256xf32>
    %21 = arith.mulf %20, %19 : vector<4x256xf32>
    %22 = arith.addf %14, %21 : vector<4x256xf32>
    %c15_i32 = arith.constant 15 : i32
    %23 = tpu.dynamic_rotate %1 by %c15_i32 dim 1 : vector<4x256xf32>, i32 -> vector<4x256xf32>
    %24 = vector.extract_strided_slice %3 {offsets = [0, 2], sizes = [4, 1], strides = [1, 1]} : vector<4x9xf32> to vector<4x1xf32>
    %25 = vector.extract_strided_slice %2 {offsets = [2, 0], sizes = [1, 256], strides = [1, 1]} : vector<9x256xf32> to vector<1x256xf32>
    %26 = vector.broadcast %25 : vector<1x256xf32> to vector<4x256xf32>
    %27 = arith.mulf %26, %23 : vector<4x256xf32>
    %28 = vector.broadcast %24 : vector<4x1xf32> to vector<4x256xf32>
    %29 = arith.mulf %28, %27 : vector<4x256xf32>
    %30 = arith.addf %22, %29 : vector<4x256xf32>
    %c1_i32 = arith.constant 1 : i32
    %31 = tpu.dynamic_rotate %1 by %c1_i32 dim 1 : vector<4x256xf32>, i32 -> vector<4x256xf32>
    %32 = vector.extract_strided_slice %3 {offsets = [0, 3], sizes = [4, 1], strides = [1, 1]} : vector<4x9xf32> to vector<4x1xf32>
    %33 = vector.extract_strided_slice %2 {offsets = [3, 0], sizes = [1, 256], strides = [1, 1]} : vector<9x256xf32> to vector<1x256xf32>
    %34 = vector.broadcast %33 : vector<1x256xf32> to vector<4x256xf32>
    %35 = arith.mulf %34, %31 : vector<4x256xf32>
    %36 = vector.broadcast %32 : vector<4x1xf32> to vector<4x256xf32>
    %37 = arith.mulf %36, %35 : vector<4x256xf32>
    %38 = arith.addf %30, %37 : vector<4x256xf32>
    %c255_i32 = arith.constant 255 : i32
    %39 = tpu.dynamic_rotate %1 by %c255_i32 dim 1 : vector<4x256xf32>, i32 -> vector<4x256xf32>
    %40 = vector.extract_strided_slice %3 {offsets = [0, 5], sizes = [4, 1], strides = [1, 1]} : vector<4x9xf32> to vector<4x1xf32>
    %41 = vector.extract_strided_slice %2 {offsets = [5, 0], sizes = [1, 256], strides = [1, 1]} : vector<9x256xf32> to vector<1x256xf32>
    %42 = vector.broadcast %41 : vector<1x256xf32> to vector<4x256xf32>
    %43 = arith.mulf %42, %39 : vector<4x256xf32>
    %44 = vector.broadcast %40 : vector<4x1xf32> to vector<4x256xf32>
    %45 = arith.mulf %44, %43 : vector<4x256xf32>
    %46 = arith.addf %38, %45 : vector<4x256xf32>
    %c241_i32 = arith.constant 241 : i32
    %47 = tpu.dynamic_rotate %1 by %c241_i32 dim 1 : vector<4x256xf32>, i32 -> vector<4x256xf32>
    %48 = vector.extract_strided_slice %3 {offsets = [0, 6], sizes = [4, 1], strides = [1, 1]} : vector<4x9xf32> to vector<4x1xf32>
    %49 = vector.extract_strided_slice %2 {offsets = [6, 0], sizes = [1, 256], strides = [1, 1]} : vector<9x256xf32> to vector<1x256xf32>
    %50 = vector.broadcast %49 : vector<1x256xf32> to vector<4x256xf32>
    %51 = arith.mulf %50, %47 : vector<4x256xf32>
    %52 = vector.broadcast %48 : vector<4x1xf32> to vector<4x256xf32>
    %53 = arith.mulf %52, %51 : vector<4x256xf32>
    %54 = arith.addf %46, %53 : vector<4x256xf32>
    %c240_i32 = arith.constant 240 : i32
    %55 = tpu.dynamic_rotate %1 by %c240_i32 dim 1 : vector<4x256xf32>, i32 -> vector<4x256xf32>
    %56 = vector.extract_strided_slice %3 {offsets = [0, 7], sizes = [4, 1], strides = [1, 1]} : vector<4x9xf32> to vector<4x1xf32>
    %57 = vector.extract_strided_slice %2 {offsets = [7, 0], sizes = [1, 256], strides = [1, 1]} : vector<9x256xf32> to vector<1x256xf32>
    %58 = vector.broadcast %57 : vector<1x256xf32> to vector<4x256xf32>
    %59 = arith.mulf %58, %55 : vector<4x256xf32>
    %60 = vector.broadcast %56 : vector<4x1xf32> to vector<4x256xf32>
    %61 = arith.mulf %60, %59 : vector<4x256xf32>
    %62 = arith.addf %54, %61 : vector<4x256xf32>
    %c239_i32 = arith.constant 239 : i32
    %63 = tpu.dynamic_rotate %1 by %c239_i32 dim 1 : vector<4x256xf32>, i32 -> vector<4x256xf32>
    %64 = vector.extract_strided_slice %3 {offsets = [0, 8], sizes = [4, 1], strides = [1, 1]} : vector<4x9xf32> to vector<4x1xf32>
    %65 = vector.extract_strided_slice %2 {offsets = [8, 0], sizes = [1, 256], strides = [1, 1]} : vector<9x256xf32> to vector<1x256xf32>
    %66 = vector.broadcast %65 : vector<1x256xf32> to vector<4x256xf32>
    %67 = arith.mulf %66, %63 : vector<4x256xf32>
    %68 = vector.broadcast %64 : vector<4x1xf32> to vector<4x256xf32>
    %69 = arith.mulf %68, %67 : vector<4x256xf32>
    %70 = arith.addf %62, %69 : vector<4x256xf32>
    %c0_6 = arith.constant 0 : index
    %c0_7 = arith.constant 0 : index
    %71 = vector.load %arg7[%c0_6, %c0_7] : memref<4x1xf32, #tpu.memory_space<vmem>>, vector<4x1xf32>
    %72 = vector.broadcast %71 : vector<4x1xf32> to vector<4x256xf32>
    %73 = arith.addf %70, %72 : vector<4x256xf32>
    %c0_8 = arith.constant 0 : index
    %c0_9 = arith.constant 0 : index
    %74 = vector.load %arg8[%c0_8, %c0_9] : memref<4x4xf32, #tpu.memory_space<vmem>>, vector<4x4xf32>
    %cst = arith.constant dense<0.000000e+00> : vector<4x256xf32>
    %75 = tpu.matmul %74, %73, %cst {dimension_numbers = #tpu.dot_dimension_numbers<[1], [0], [0], [1], [0, 0, 1, 1], [], []>} : vector<4x4xf32>, vector<4x256xf32>, vector<4x256xf32> -> vector<4x256xf32>
    %c0_10 = arith.constant 0 : index
    %c0_11 = arith.constant 0 : index
    %76 = vector.load %arg9[%c0_10, %c0_11] : memref<4x1xf32, #tpu.memory_space<vmem>>, vector<4x1xf32>
    %77 = vector.broadcast %76 : vector<4x1xf32> to vector<4x256xf32>
    %78 = arith.addf %75, %77 : vector<4x256xf32>
    %cst_12 = arith.constant dense<0.000000e+00> : vector<4xf32>
    %79 = vector.multi_reduction <add>, %78, %cst_12 [1] : vector<4x256xf32> to vector<4xf32>
    %80 = vector.shape_cast %79 : vector<4xf32> to vector<4x1xf32>
    %c0_13 = arith.constant 0 : index
    %c0_14 = arith.constant 0 : index
    %81 = vector.load %arg10[%c0_13, %c0_14] : memref<4x4xf32, #tpu.memory_space<vmem>>, vector<4x4xf32>
    %cst_15 = arith.constant dense<0.000000e+00> : vector<4x1xf32>
    %82 = tpu.matmul %81, %80, %cst_15 {dimension_numbers = #tpu.dot_dimension_numbers<[1], [0], [0], [1], [0, 0, 1, 1], [], []>} : vector<4x4xf32>, vector<4x1xf32>, vector<4x1xf32> -> vector<4x1xf32>
    %cst_16 = arith.constant 3.906250e-03 : f32
    %83 = vector.broadcast %cst_16 : f32 to vector<4x1xf32>
    %84 = arith.mulf %82, %83 : vector<4x1xf32>
    %85 = vector.broadcast %84 : vector<4x1xf32> to vector<4x256xf32>
    %86 = arith.subf %78, %85 : vector<4x256xf32>
    %87 = arith.mulf %86, %86 : vector<4x256xf32>
    %cst_17 = arith.constant dense<0.000000e+00> : vector<4xf32>
    %88 = vector.multi_reduction <add>, %87, %cst_17 [1] : vector<4x256xf32> to vector<4xf32>
    %89 = vector.shape_cast %88 : vector<4xf32> to vector<4x1xf32>
    %c0_18 = arith.constant 0 : index
    %c0_19 = arith.constant 0 : index
    %90 = vector.load %arg10[%c0_18, %c0_19] : memref<4x4xf32, #tpu.memory_space<vmem>>, vector<4x4xf32>
    %cst_20 = arith.constant dense<0.000000e+00> : vector<4x1xf32>
    %91 = tpu.matmul %90, %89, %cst_20 {dimension_numbers = #tpu.dot_dimension_numbers<[1], [0], [0], [1], [0, 0, 1, 1], [], []>} : vector<4x4xf32>, vector<4x1xf32>, vector<4x1xf32> -> vector<4x1xf32>
    %cst_21 = arith.constant 3.906250e-03 : f32
    %92 = vector.broadcast %cst_21 : f32 to vector<4x1xf32>
    %93 = arith.mulf %91, %92 : vector<4x1xf32>
    %cst_22 = arith.constant 9.99999997E-7 : f32
    %94 = vector.broadcast %cst_22 : f32 to vector<4x1xf32>
    %95 = arith.addf %93, %94 : vector<4x1xf32>
    %96 = math.rsqrt %95 : vector<4x1xf32>
    %97 = vector.broadcast %96 : vector<4x1xf32> to vector<4x256xf32>
    %98 = arith.mulf %86, %97 : vector<4x256xf32>
    %c0_23 = arith.constant 0 : index
    %c0_24 = arith.constant 0 : index
    %99 = vector.load %arg11[%c0_23, %c0_24] : memref<4x1xf32, #tpu.memory_space<vmem>>, vector<4x1xf32>
    %100 = vector.broadcast %99 : vector<4x1xf32> to vector<4x256xf32>
    %101 = arith.mulf %98, %100 : vector<4x256xf32>
    %c0_25 = arith.constant 0 : index
    %c0_26 = arith.constant 0 : index
    %102 = vector.load %arg12[%c0_25, %c0_26] : memref<4x1xf32, #tpu.memory_space<vmem>>, vector<4x1xf32>
    %103 = vector.broadcast %102 : vector<4x1xf32> to vector<4x256xf32>
    %104 = arith.addf %101, %103 : vector<4x256xf32>
    %105 = arith.negf %104 : vector<4x256xf32>
    %106 = math.exp %105 : vector<4x256xf32>
    %cst_27 = arith.constant 1.000000e+00 : f32
    %107 = vector.broadcast %cst_27 : f32 to vector<4x256xf32>
    %108 = arith.addf %107, %106 : vector<4x256xf32>
    %109 = arith.divf %107, %108 : vector<4x256xf32>
    %110 = arith.mulf %104, %109 : vector<4x256xf32>
    %c0_28 = arith.constant 0 : index
    %c0_29 = arith.constant 0 : index
    %111 = vector.load %arg13[%c0_28, %c0_29] : memref<4x9xf32, #tpu.memory_space<vmem>>, vector<4x9xf32>
    %112 = vector.extract_strided_slice %111 {offsets = [0, 4], sizes = [4, 1], strides = [1, 1]} : vector<4x9xf32> to vector<4x1xf32>
    %113 = vector.broadcast %112 : vector<4x1xf32> to vector<4x256xf32>
    %114 = arith.mulf %113, %110 : vector<4x256xf32>
    %c17_i32_30 = arith.constant 17 : i32
    %115 = tpu.dynamic_rotate %110 by %c17_i32_30 dim 1 : vector<4x256xf32>, i32 -> vector<4x256xf32>
    %116 = vector.extract_strided_slice %111 {offsets = [0, 0], sizes = [4, 1], strides = [1, 1]} : vector<4x9xf32> to vector<4x1xf32>
    %117 = vector.extract_strided_slice %2 {offsets = [0, 0], sizes = [1, 256], strides = [1, 1]} : vector<9x256xf32> to vector<1x256xf32>
    %118 = vector.broadcast %117 : vector<1x256xf32> to vector<4x256xf32>
    %119 = arith.mulf %118, %115 : vector<4x256xf32>
    %120 = vector.broadcast %116 : vector<4x1xf32> to vector<4x256xf32>
    %121 = arith.mulf %120, %119 : vector<4x256xf32>
    %122 = arith.addf %114, %121 : vector<4x256xf32>
    %c16_i32_31 = arith.constant 16 : i32
    %123 = tpu.dynamic_rotate %110 by %c16_i32_31 dim 1 : vector<4x256xf32>, i32 -> vector<4x256xf32>
    %124 = vector.extract_strided_slice %111 {offsets = [0, 1], sizes = [4, 1], strides = [1, 1]} : vector<4x9xf32> to vector<4x1xf32>
    %125 = vector.extract_strided_slice %2 {offsets = [1, 0], sizes = [1, 256], strides = [1, 1]} : vector<9x256xf32> to vector<1x256xf32>
    %126 = vector.broadcast %125 : vector<1x256xf32> to vector<4x256xf32>
    %127 = arith.mulf %126, %123 : vector<4x256xf32>
    %128 = vector.broadcast %124 : vector<4x1xf32> to vector<4x256xf32>
    %129 = arith.mulf %128, %127 : vector<4x256xf32>
    %130 = arith.addf %122, %129 : vector<4x256xf32>
    %c15_i32_32 = arith.constant 15 : i32
    %131 = tpu.dynamic_rotate %110 by %c15_i32_32 dim 1 : vector<4x256xf32>, i32 -> vector<4x256xf32>
    %132 = vector.extract_strided_slice %111 {offsets = [0, 2], sizes = [4, 1], strides = [1, 1]} : vector<4x9xf32> to vector<4x1xf32>
    %133 = vector.extract_strided_slice %2 {offsets = [2, 0], sizes = [1, 256], strides = [1, 1]} : vector<9x256xf32> to vector<1x256xf32>
    %134 = vector.broadcast %133 : vector<1x256xf32> to vector<4x256xf32>
    %135 = arith.mulf %134, %131 : vector<4x256xf32>
    %136 = vector.broadcast %132 : vector<4x1xf32> to vector<4x256xf32>
    %137 = arith.mulf %136, %135 : vector<4x256xf32>
    %138 = arith.addf %130, %137 : vector<4x256xf32>
    %c1_i32_33 = arith.constant 1 : i32
    %139 = tpu.dynamic_rotate %110 by %c1_i32_33 dim 1 : vector<4x256xf32>, i32 -> vector<4x256xf32>
    %140 = vector.extract_strided_slice %111 {offsets = [0, 3], sizes = [4, 1], strides = [1, 1]} : vector<4x9xf32> to vector<4x1xf32>
    %141 = vector.extract_strided_slice %2 {offsets = [3, 0], sizes = [1, 256], strides = [1, 1]} : vector<9x256xf32> to vector<1x256xf32>
    %142 = vector.broadcast %141 : vector<1x256xf32> to vector<4x256xf32>
    %143 = arith.mulf %142, %139 : vector<4x256xf32>
    %144 = vector.broadcast %140 : vector<4x1xf32> to vector<4x256xf32>
    %145 = arith.mulf %144, %143 : vector<4x256xf32>
    %146 = arith.addf %138, %145 : vector<4x256xf32>
    %c255_i32_34 = arith.constant 255 : i32
    %147 = tpu.dynamic_rotate %110 by %c255_i32_34 dim 1 : vector<4x256xf32>, i32 -> vector<4x256xf32>
    %148 = vector.extract_strided_slice %111 {offsets = [0, 5], sizes = [4, 1], strides = [1, 1]} : vector<4x9xf32> to vector<4x1xf32>
    %149 = vector.extract_strided_slice %2 {offsets = [5, 0], sizes = [1, 256], strides = [1, 1]} : vector<9x256xf32> to vector<1x256xf32>
    %150 = vector.broadcast %149 : vector<1x256xf32> to vector<4x256xf32>
    %151 = arith.mulf %150, %147 : vector<4x256xf32>
    %152 = vector.broadcast %148 : vector<4x1xf32> to vector<4x256xf32>
    %153 = arith.mulf %152, %151 : vector<4x256xf32>
    %154 = arith.addf %146, %153 : vector<4x256xf32>
    %c241_i32_35 = arith.constant 241 : i32
    %155 = tpu.dynamic_rotate %110 by %c241_i32_35 dim 1 : vector<4x256xf32>, i32 -> vector<4x256xf32>
    %156 = vector.extract_strided_slice %111 {offsets = [0, 6], sizes = [4, 1], strides = [1, 1]} : vector<4x9xf32> to vector<4x1xf32>
    %157 = vector.extract_strided_slice %2 {offsets = [6, 0], sizes = [1, 256], strides = [1, 1]} : vector<9x256xf32> to vector<1x256xf32>
    %158 = vector.broadcast %157 : vector<1x256xf32> to vector<4x256xf32>
    %159 = arith.mulf %158, %155 : vector<4x256xf32>
    %160 = vector.broadcast %156 : vector<4x1xf32> to vector<4x256xf32>
    %161 = arith.mulf %160, %159 : vector<4x256xf32>
    %162 = arith.addf %154, %161 : vector<4x256xf32>
    %c240_i32_36 = arith.constant 240 : i32
    %163 = tpu.dynamic_rotate %110 by %c240_i32_36 dim 1 : vector<4x256xf32>, i32 -> vector<4x256xf32>
    %164 = vector.extract_strided_slice %111 {offsets = [0, 7], sizes = [4, 1], strides = [1, 1]} : vector<4x9xf32> to vector<4x1xf32>
    %165 = vector.extract_strided_slice %2 {offsets = [7, 0], sizes = [1, 256], strides = [1, 1]} : vector<9x256xf32> to vector<1x256xf32>
    %166 = vector.broadcast %165 : vector<1x256xf32> to vector<4x256xf32>
    %167 = arith.mulf %166, %163 : vector<4x256xf32>
    %168 = vector.broadcast %164 : vector<4x1xf32> to vector<4x256xf32>
    %169 = arith.mulf %168, %167 : vector<4x256xf32>
    %170 = arith.addf %162, %169 : vector<4x256xf32>
    %c239_i32_37 = arith.constant 239 : i32
    %171 = tpu.dynamic_rotate %110 by %c239_i32_37 dim 1 : vector<4x256xf32>, i32 -> vector<4x256xf32>
    %172 = vector.extract_strided_slice %111 {offsets = [0, 8], sizes = [4, 1], strides = [1, 1]} : vector<4x9xf32> to vector<4x1xf32>
    %173 = vector.extract_strided_slice %2 {offsets = [8, 0], sizes = [1, 256], strides = [1, 1]} : vector<9x256xf32> to vector<1x256xf32>
    %174 = vector.broadcast %173 : vector<1x256xf32> to vector<4x256xf32>
    %175 = arith.mulf %174, %171 : vector<4x256xf32>
    %176 = vector.broadcast %172 : vector<4x1xf32> to vector<4x256xf32>
    %177 = arith.mulf %176, %175 : vector<4x256xf32>
    %178 = arith.addf %170, %177 : vector<4x256xf32>
    %c0_38 = arith.constant 0 : index
    %c0_39 = arith.constant 0 : index
    %179 = vector.load %arg14[%c0_38, %c0_39] : memref<4x1xf32, #tpu.memory_space<vmem>>, vector<4x1xf32>
    %180 = vector.broadcast %179 : vector<4x1xf32> to vector<4x256xf32>
    %181 = arith.addf %178, %180 : vector<4x256xf32>
    %c0_40 = arith.constant 0 : index
    %c0_41 = arith.constant 0 : index
    %182 = vector.load %arg15[%c0_40, %c0_41] : memref<4x4xf32, #tpu.memory_space<vmem>>, vector<4x4xf32>
    %cst_42 = arith.constant dense<0.000000e+00> : vector<4x256xf32>
    %183 = tpu.matmul %182, %181, %cst_42 {dimension_numbers = #tpu.dot_dimension_numbers<[1], [0], [0], [1], [0, 0, 1, 1], [], []>} : vector<4x4xf32>, vector<4x256xf32>, vector<4x256xf32> -> vector<4x256xf32>
    %c0_43 = arith.constant 0 : index
    %c0_44 = arith.constant 0 : index
    %184 = vector.load %arg16[%c0_43, %c0_44] : memref<4x1xf32, #tpu.memory_space<vmem>>, vector<4x1xf32>
    %185 = vector.broadcast %184 : vector<4x1xf32> to vector<4x256xf32>
    %186 = arith.addf %183, %185 : vector<4x256xf32>
    %c0_45 = arith.constant 0 : index
    %c0_46 = arith.constant 0 : index
    %c0_47 = arith.constant 0 : index
    %187 = vector.load %arg2[%c0_45, %c0_46, %c0_47] : memref<1x4x256xf32, #tpu.memory_space<vmem>>, vector<1x4x256xf32>
    %188 = vector.shape_cast %187 : vector<1x4x256xf32> to vector<4x256xf32>
    %c0_48 = arith.constant 0 : index
    %c0_49 = arith.constant 0 : index
    %c0_50 = arith.constant 0 : index
    %189 = vector.load %arg3[%c0_48, %c0_49, %c0_50] : memref<1x4x256xf32, #tpu.memory_space<vmem>>, vector<1x4x256xf32>
    %190 = vector.shape_cast %189 : vector<1x4x256xf32> to vector<4x256xf32>
    %191 = arith.addf %188, %190 : vector<4x256xf32>
    %192 = arith.negf %191 : vector<4x256xf32>
    %193 = math.exp %192 : vector<4x256xf32>
    %cst_51 = arith.constant 1.000000e+00 : f32
    %194 = vector.broadcast %cst_51 : f32 to vector<4x256xf32>
    %195 = arith.addf %194, %193 : vector<4x256xf32>
    %196 = arith.divf %194, %195 : vector<4x256xf32>
    %197 = arith.negf %186 : vector<4x256xf32>
    %198 = math.exp %197 : vector<4x256xf32>
    %cst_52 = arith.constant 1.000000e+00 : f32
    %199 = vector.broadcast %cst_52 : f32 to vector<4x256xf32>
    %200 = arith.addf %199, %198 : vector<4x256xf32>
    %201 = arith.divf %199, %200 : vector<4x256xf32>
    %202 = arith.mulf %186, %196 : vector<4x256xf32>
    %203 = arith.addf %202, %186 : vector<4x256xf32>
    %204 = arith.mulf %191, %201 : vector<4x256xf32>
    %205 = arith.addf %204, %191 : vector<4x256xf32>
    %c0_53 = arith.constant 0 : index
    %c0_54 = arith.constant 0 : index
    %206 = vector.load %arg17[%c0_53, %c0_54] : memref<8x4xf32, #tpu.memory_space<vmem>>, vector<8x4xf32>
    %cst_55 = arith.constant dense<0.000000e+00> : vector<8x256xf32>
    %207 = tpu.matmul %206, %205, %cst_55 {dimension_numbers = #tpu.dot_dimension_numbers<[1], [0], [0], [1], [0, 0, 1, 1], [], []>} : vector<8x4xf32>, vector<4x256xf32>, vector<8x256xf32> -> vector<8x256xf32>
    %c0_56 = arith.constant 0 : index
    %c0_57 = arith.constant 0 : index
    %208 = vector.load %arg18[%c0_56, %c0_57] : memref<8x4xf32, #tpu.memory_space<vmem>>, vector<8x4xf32>
    %cst_58 = arith.constant dense<0.000000e+00> : vector<8x256xf32>
    %209 = tpu.matmul %208, %203, %cst_58 {dimension_numbers = #tpu.dot_dimension_numbers<[1], [0], [0], [1], [0, 0, 1, 1], [], []>} : vector<8x4xf32>, vector<4x256xf32>, vector<8x256xf32> -> vector<8x256xf32>
    %210 = arith.addf %207, %209 : vector<8x256xf32>
    %c0_59 = arith.constant 0 : index
    %c0_60 = arith.constant 0 : index
    %211 = vector.load %arg19[%c0_59, %c0_60] : memref<8x1xf32, #tpu.memory_space<vmem>>, vector<8x1xf32>
    %212 = vector.broadcast %211 : vector<8x1xf32> to vector<8x256xf32>
    %213 = arith.addf %210, %212 : vector<8x256xf32>
    %c0_61 = arith.constant 0 : index
    %c0_62 = arith.constant 0 : index
    %c0_63 = arith.constant 0 : index
    %214 = vector.load %arg4[%c0_61, %c0_62, %c0_63] : memref<1x8x256xf32, #tpu.memory_space<vmem>>, vector<1x8x256xf32>
    %215 = vector.shape_cast %214 : vector<1x8x256xf32> to vector<8x256xf32>
    %216 = arith.addf %215, %213 : vector<8x256xf32>
    %c0_64 = arith.constant 0 : index
    %c0_65 = arith.constant 0 : index
    %c0_66 = arith.constant 0 : index
    %217 = vector.load %arg20[%c0_64, %c0_65, %c0_66] : memref<1x8x256xf32, #tpu.memory_space<vmem>>, vector<1x8x256xf32>
    %218 = vector.shape_cast %217 : vector<1x8x256xf32> to vector<8x256xf32>
    %219 = vector.shape_cast %216 : vector<8x256xf32> to vector<1x8x256xf32>
    tpu.vector_store %arg20[%c0_64, %c0_65, %c0_66], %219 {strides = array<i32>} : memref<1x8x256xf32, #tpu.memory_space<vmem>>, vector<1x8x256xf32>,
    return
  }
  func.func @transform_0(%arg0: i32) -> (i32, i32, i32) {
    %c0_i32 = arith.constant 0 : i32
    %c0_i32_0 = arith.constant 0 : i32
    %c0_i32_1 = arith.constant 0 : i32
    return %arg0, %c0_i32, %c0_i32_0 : i32, i32, i32
  }
  func.func @transform_1(%arg0: i32) -> (i32, i32, i32) {
    %c0_i32 = arith.constant 0 : i32
    %c0_i32_0 = arith.constant 0 : i32
    %c0_i32_1 = arith.constant 0 : i32
    return %arg0, %c0_i32, %c0_i32_0 : i32, i32, i32
  }
  func.func @transform_2(%arg0: i32) -> (i32, i32, i32) {
    %c0_i32 = arith.constant 0 : i32
    %c0_i32_0 = arith.constant 0 : i32
    %c0_i32_1 = arith.constant 0 : i32
    return %arg0, %c0_i32, %c0_i32_0 : i32, i32, i32
  }
  func.func @transform_3(%arg0: i32) -> (i32, i32, i32) {
    %c0_i32 = arith.constant 0 : i32
    %c0_i32_0 = arith.constant 0 : i32
    %c0_i32_1 = arith.constant 0 : i32
    return %arg0, %c0_i32, %c0_i32_0 : i32, i32, i32
  }
  func.func @transform_4(%arg0: i32) -> (i32, i32) {
    %c0_i32 = arith.constant 0 : i32
    %c0_i32_0 = arith.constant 0 : i32
    %c0_i32_1 = arith.constant 0 : i32
    return %c0_i32, %c0_i32_0 : i32, i32
  }
  func.func @transform_5(%arg0: i32) -> (i32, i32) {
    %c0_i32 = arith.constant 0 : i32
    %c0_i32_0 = arith.constant 0 : i32
    %c0_i32_1 = arith.constant 0 : i32
    return %c0_i32, %c0_i32_0 : i32, i32
  }
  func.func @transform_6(%arg0: i32) -> (i32, i32) {
    %c0_i32 = arith.constant 0 : i32
    %c0_i32_0 = arith.constant 0 : i32
    %c0_i32_1 = arith.constant 0 : i32
    return %c0_i32, %c0_i32_0 : i32, i32
  }
  func.func @transform_7(%arg0: i32) -> (i32, i32) {
    %c0_i32 = arith.constant 0 : i32
    %c0_i32_0 = arith.constant 0 : i32
    %c0_i32_1 = arith.constant 0 : i32
    return %c0_i32, %c0_i32_0 : i32, i32
  }
  func.func @transform_8(%arg0: i32) -> (i32, i32) {
    %c0_i32 = arith.constant 0 : i32
    %c0_i32_0 = arith.constant 0 : i32
    %c0_i32_1 = arith.constant 0 : i32
    return %c0_i32, %c0_i32_0 : i32, i32
  }
  func.func @transform_9(%arg0: i32) -> (i32, i32) {
    %c0_i32 = arith.constant 0 : i32
    %c0_i32_0 = arith.constant 0 : i32
    %c0_i32_1 = arith.constant 0 : i32
    return %c0_i32, %c0_i32_0 : i32, i32
  }
  func.func @transform_10(%arg0: i32) -> (i32, i32) {
    %c0_i32 = arith.constant 0 : i32
    %c0_i32_0 = arith.constant 0 : i32
    %c0_i32_1 = arith.constant 0 : i32
    return %c0_i32, %c0_i32_0 : i32, i32
  }
  func.func @transform_11(%arg0: i32) -> (i32, i32) {
    %c0_i32 = arith.constant 0 : i32
    %c0_i32_0 = arith.constant 0 : i32
    %c0_i32_1 = arith.constant 0 : i32
    return %c0_i32, %c0_i32_0 : i32, i32
  }
  func.func @transform_12(%arg0: i32) -> (i32, i32) {
    %c0_i32 = arith.constant 0 : i32
    %c0_i32_0 = arith.constant 0 : i32
    %c0_i32_1 = arith.constant 0 : i32
    return %c0_i32, %c0_i32_0 : i32, i32
  }
  func.func @transform_13(%arg0: i32) -> (i32, i32) {
    %c0_i32 = arith.constant 0 : i32
    %c0_i32_0 = arith.constant 0 : i32
    %c0_i32_1 = arith.constant 0 : i32
    return %c0_i32, %c0_i32_0 : i32, i32
  }
  func.func @transform_14(%arg0: i32) -> (i32, i32) {
    %c0_i32 = arith.constant 0 : i32
    %c0_i32_0 = arith.constant 0 : i32
    %c0_i32_1 = arith.constant 0 : i32
    return %c0_i32, %c0_i32_0 : i32, i32
  }
  func.func @transform_15(%arg0: i32) -> (i32, i32) {
    %c0_i32 = arith.constant 0 : i32
    %c0_i32_0 = arith.constant 0 : i32
    %c0_i32_1 = arith.constant 0 : i32
    return %c0_i32, %c0_i32_0 : i32, i32
  }
  func.func @transform_16(%arg0: i32) -> (i32, i32) {
    %c0_i32 = arith.constant 0 : i32
    %c0_i32_0 = arith.constant 0 : i32
    %c0_i32_1 = arith.constant 0 : i32
    return %c0_i32, %c0_i32_0 : i32, i32
  }
  func.func @transform_17(%arg0: i32) -> (i32, i32) {
    %c0_i32 = arith.constant 0 : i32
    %c0_i32_0 = arith.constant 0 : i32
    %c0_i32_1 = arith.constant 0 : i32
    return %c0_i32, %c0_i32_0 : i32, i32
  }
  func.func @transform_18(%arg0: i32) -> (i32, i32) {
    %c0_i32 = arith.constant 0 : i32
    %c0_i32_0 = arith.constant 0 : i32
    %c0_i32_1 = arith.constant 0 : i32
    return %c0_i32, %c0_i32_0 : i32, i32
  }
  func.func @transform_19(%arg0: i32) -> (i32, i32, i32) {
    %c0_i32 = arith.constant 0 : i32
    %c0_i32_0 = arith.constant 0 : i32
    %c0_i32_1 = arith.constant 0 : i32
    return %arg0, %c0_i32, %c0_i32_0 : i32, i32, i32
  }
}

</mosaic_0001>

<bundles_post_ra>
// kernel: res_four11_forward.3
= control target key start
LH: loop header
LB: loop body
LE: loop exit
PB: predicated region body
PF: predicated region fallthrough
CT: control target
= control target key end

     0   :  { %s1365_s25 = smov 0   ;;  %s1461_s0 = inlined_call_operand.vmem [shape: f32[2,8,256], index: 0, kind: input, shape index: {}]   ;;  %s1462_s1 = inlined_call_operand.vmem [shape: f32[16,8], index: 1, kind: input, shape index: {}]   ;;  %s1463_s2 = inlined_call_operand.vmem [shape: f32[8,8], index: 2, kind: input, shape index: {}]   ;;  %s1464_s3 = inlined_call_operand.vmem [shape: f32[8,1], index: 3, kind: input, shape index: {}]   ;;  %s1465_s4 = inlined_call_operand.vmem [shape: f32[8,8], index: 4, kind: input, shape index: {}]   ;;  %s1466_s5 = inlined_call_operand.vmem [shape: f32[8,1], index: 5, kind: input, shape index: {}]   ;;  %s1467_s6 = inlined_call_operand.vmem [shape: f32[8,16], index: 6, kind: input, shape index: {}]   ;;  %s1468_s7 = inlined_call_operand.vmem [shape: f32[8,8], index: 7, kind: input, shape index: {}]   ;;  %s1469_s8 = inlined_call_operand.vmem [shape: f32[8,1], index: 8, kind: input, shape index: {}]   ;;  %s1470_s9 = inlined_call_operand.vmem [shape: f32[8,1], index: 9, kind: input, shape index: {}]   ;;  %s1471_s10 = inlined_call_operand.vmem [shape: f32[8,8], index: 10, kind: input, shape index: {}]   ;;  %s1472_s11 = inlined_call_operand.vmem [shape: f32[8,1], index: 11, kind: input, shape index: {}]   ;;  %s1473_s12 = inlined_call_operand.vmem [shape: f32[2,4,256], index: 12, kind: output, shape index: {0}]   ;;  %s1474_s13 = inlined_call_operand.vmem [shape: f32[2,4,256], index: 13, kind: output, shape index: {1}]  }
   0x1 LB: > { %s1203_s26 = sadd.s32 4294967295, %s1289_s25   ;;  %p1207_p0 = scmp.ge.s32.totalorder %s1289_s25, 1  ;;  %s1289_s25 = sphi %s1365_s25, %s24_s25  }
   0x2   : > { %p390_p1 = scmp.lt.s32.totalorder %s1289_s25, 3 }
   0x4   : > { %p391_p2 = pnand %p1207_p0, %p390_p1 }
   0x5   : > { %p439_p3 = scmp.lt.s32.totalorder (!%p391_p2), %s1203_s26, 1  ;;  %v1291_v0 = vmov (!%p391_p2), 0.0   ;;  %v456_v3 = vld [vmem:[%s1462_s1] sm:$0xff] (!%p391_p2)  ;;  %vm458_vm0 = vcmask (!%p391_p2), 64512   ;;  %v457_v4 = vld [vmem:[%s1462_s1 + $0x8] sm:$0xff] (!%p391_p2)  ;;  %v1292_v6 = vmov (!%p391_p2), 0  }
   0x6   : > { %394 = sbr.rel (%p391_p2) target bundleno = 2163 (0x873), region = 68  ;;  %529 = vmatprep.mubr.f32.mxu0 (!%p391_p2), %v1291_v0  ;;  %636 = vmatprep.mubr.f32.mxu1 (!%p391_p2), %v1291_v0  ;;  %v563_v5 = vld [vmem:[%s1464_s3] sm:$0xff] (!%p391_p2)  ;;  %vm1293_vm9 = vmmov (!%p391_p2), 1   ;;  %vm747_vm12 = vcmask (!%p391_p2), 130048   ;;  %vm1294_vm13 = vmmov (!%p391_p2), 0  }
   0x7   : > { %1263 = vset.pattern.permute.xlu0 (!%p391_p2), %v1292_v6  ;;  %1264 = vset.pattern.permute.xlu1 (!%p391_p2), %v1292_v6  ;;  %v650_v7 = vld [vmem:[%s1466_s5] sm:$0xff] (!%p391_p2) }
   0x8   : > { %566 = vperm.xlu0 (!%p391_p2), %1263, %v563_v5   ;;  %v562_v27 = vld [vmem:[%s1463_s2] sm:$0xff] (!%p391_p2) }
   0x9   : > { %v649_v37 = vld [vmem:[%s1465_s4] sm:$0xff] (!%p391_p2) }
   0xa   : > { %v746_v58 = vld [vmem:[%s1467_s6] sm:$0xff] (!%p391_p2) }
   0xb   : > { %v994_v6 = vld [vmem:[%s1469_s8] sm:$0xff] (!%p391_p2) }
   0xc   : > { %653 = vperm.xlu0 (!%p391_p2), %1263, %v650_v7  }
   0xd   : > { %s1476_s26 = smov (!%p439_p3, %s1203_s26), 1 }
   0xe   : > { %s1228_s27 = sshll.u32 %s1476_s26, 4  ;;  %s1229_s23 = sshll.u32 %s1476_s26, 3 }
   0xf   : > { %s443_s30 = scalar_lea.vmem %s1461_s0, %s1228_s27  ;;  %s448_s28 = scalar_lea.vmem %s1473_s12, %s1229_s23 }
  0x10   : > { %v1381_v1 = vld [vmem:[%s443_s30 + $0x8] sm:$0xff]  ;;  %v1383_v2 = vld [vmem:[%s443_s30] sm:$0xff]  ;;  %s453_s30 = scalar_lea.vmem %s1474_s13, %s1229_s23 }
  0x11   : > { %465 = vmatprep.subr.mxu0 %v1381_v1 }
  0x12   : > { %466 = vmatpush1.msra.mxu0 %v1383_v2 }
  0x13   : > { %1214 = vmatmul.mubr.msk.f32.vlgmr.msra.gmra.mrb[0].mxu0 %vm458_vm0, %v456_v3  ;;  %v827_v3 = vld [vmem:[%s1468_s7] sm:$0xff] }
  0x14   : > { %535 = vmatprep.mubr.f32.mxu0 %v1291_v0 }
  0x17   : > { %1215 = vmatmul.mubr.msk.f32.gmra.mrb[2].mxu0 %vm458_vm0, %v457_v4 }
  0x18   : > { %815 = vmatprep.mubr.f32.mxu0 %v1291_v0 }
  0x87   : > { %v567_v29 = vpop.permute.xlu0 %566 }
  0x8b   : > { %v654_v41 = vpop.permute.xlu0 %653 }
  0xe6   : > { %v531_v8 = vpop.f32.mrb[0].mxu0 }
  0xe7   : > { %v1403_v9 = vpop.f32.mrb[1].mxu0  ;;  %v542_v11 = vmul.f32 %v531_v8, %v531_v8 }
  0xe8   : > { %v543_v14 = vmul.f32 %v1403_v9, %v1403_v9 }
  0xea   : > { %v537_v10 = vpop.f32.mrb[2].mxu0 }
  0xeb   : > { %v544_v12 = vmul.f32 %v537_v10, %v537_v10  ;;  %v539_v13 = vpop.f32.mrb[3].mxu0 }
  0xec   : > { %v545_v15 = vmul.f32 %v539_v13, %v539_v13 }
  0xed   : > { %v546_v16 = vadd.f32 %v544_v12, %v542_v11 }
  0xee   : > { %v547_v17 = vadd.f32 %v545_v15, %v543_v14 }
  0xef   : > { %1265 = vrsqrt.f32 %v546_v16  ;;  %vm550_vm1 = vcmp.eq.f32.partialorder %v546_v16, inf  ;;  %v553_v25 = vand.u32 2147483648, %v546_v16  ;;  %vm552_vm4 = vcmp.eq.f32.partialorder %v546_v16, 0.0 }
  0xf0   : > { %1267 = vrsqrt.f32 %v547_v17  ;;  %vm557_vm2 = vcmp.eq.f32.partialorder %v547_v17, inf  ;;  %v560_v22 = vand.u32 2147483648, %v547_v17  ;;  %vm559_vm3 = vcmp.eq.f32.partialorder %v547_v17, 0.0 }
  0xf9   : > { %v1266_v18 = vpop.eup %1265 }
  0xfa   : > { %v1268_v19 = vpop.eup %1267  ;;  %v549_v20 = vmul.f32 %v1266_v18, %v546_v16  ;;  %v1002_v18 = vld [vmem:[%s1470_s9] sm:$0xff] }
  0xfb   : > { %v556_v21 = vmul.f32 %v1268_v19, %v547_v17  ;;  %v1011_v19 = vld [vmem:[%s1472_s11] sm:$0xff] }
  0xfc   : > { %v551_v23 = vsel %vm550_vm1, %v546_v16, %v549_v20 }
  0xfd   : > { %v558_v24 = vsel %vm557_vm2, %v547_v17, %v556_v21  ;;  %v554_v28 = vsel %vm552_vm4, %v553_v25, %v551_v23 }
  0xfe   : > { %v561_v26 = vsel %vm559_vm3, %v560_v22, %v558_v24  ;;  %vm730_vm7 = vcmp.gt.f32.partialorder %v554_v28, 0.0 }
  0xff   : > { %572 = vmatprep.subr.mxu1 %v561_v26  ;;  %vm731_vm8 = vcmp.gt.f32.partialorder %v561_v26, 0.0  ;;  %v732_v39 = vsel %vm730_vm7, %v554_v28, 1.0  ;;  %vm1249_vm11 = vmpackc.low %vm730_vm7, %vm1293_vm9 }
 0x100   : > { %573 = vmatpush1.msra.mxu1 %v554_v28  ;;  %v733_v40 = vsel %vm731_vm8, %v561_v26, 1.0  ;;  %1269 = vrcp.f32 %v732_v39  ;;  %vm1246_vm10 = vmpackc.low %vm731_vm8, %vm1293_vm9 }
 0x101   : > { %1216 = vmatmul.mubr.msk.f32.vlgmr.msra.gmra.mrb[0].mxu1 %vm458_vm0, %v562_v27  ;;  %1271 = vrcp.f32 %v733_v40 }
 0x102   : > { %723 = vmatprep.mubr.f32.mxu1 %v1291_v0 }
 0x10a   : > { %v1270_v45 = vpop.eup %1269 }
 0x10b   : > { %v1272_v47 = vpop.eup %1271 }
 0x1d4   : > { %v638_v30 = vpop.f32.mrb[0].mxu1 }
 0x1d5   : > { %v639_v31 = vadd.f32 %v638_v30, %v567_v29  ;;  %v640_v32 = vpop.f32.mrb[1].mxu1 }
 0x1d6   : > { %v641_v33 = vadd.f32 %v640_v32, %v567_v29  ;;  %v1010_v29 = vld [vmem:[%s1471_s10] sm:$0xff] }
 0x1d7   : > { %v645_v34 = vmul.f32 0.1, %v639_v31  ;;  %vm643_vm5 = vcmp.ge.f32.partialorder %v639_v31, 0.0 }
 0x1d8   : > { %v646_v35 = vmul.f32 0.1, %v641_v33  ;;  %vm644_vm6 = vcmp.ge.f32.partialorder %v641_v33, 0.0 }
 0x1d9   : > { %v647_v38 = vsel %vm643_vm5, %v639_v31, %v645_v34 }
 0x1da   : > { %v648_v36 = vsel %vm644_vm6, %v641_v33, %v646_v35 }
 0x1db   : > { %659 = vmatprep.subr.mxu1 %v648_v36 }
 0x1dc   : > { %660 = vmatpush1.msra.mxu1 %v647_v38 }
 0x1dd   : > { %1217 = vmatmul.mubr.msk.f32.vlgmr.msra.gmra.mrb[2].mxu1 %vm458_vm0, %v649_v37  ;;  %1235 = vmatprep.subr.mxu1 %v1291_v0 }
 0x1de   : > { %1237 = vmatprep.mubr.msk.f32.mxu1 %vm1294_vm13, %v1291_v0 }
 0x2b0   : > { %v725_v42 = vpop.f32.mrb[2].mxu1 }
 0x2b1   : > { %v726_v43 = vadd.f32 %v725_v42, %v654_v41  ;;  %v727_v44 = vpop.f32.mrb[3].mxu1 }
 0x2b2   : > { %v728_v46 = vadd.f32 %v727_v44, %v654_v41 }
 0x2b3   : > { %v735_v48 = vmul.f32 %v1270_v45, %v726_v43 }
 0x2b4   : > { %v737_v49 = vmul.f32 %v1272_v47, %v728_v46 }
 0x2b5   : > { %v738_v50 = vmul.f32 %v735_v48, %v531_v8  ;;  %v742_v51 = vmul.f32 %v735_v48, %v537_v10 }
 0x2b6   : > { %v739_v52 = vmul.f32 %v737_v49, %v1403_v9  ;;  %v743_v53 = vmul.f32 %v737_v49, %v539_v13 }
 0x2b7   : > { %v740_v54 = vsel %vm730_vm7, %v738_v50, %v726_v43 }
 0x2b8   : > { %v1248_v55 = vpack.c.bf16 %v742_v51, %v740_v54  ;;  %v741_v56 = vsel %vm731_vm8, %v739_v52, %v728_v46 }
 0x2b9   : > { %v1245_v57 = vpack.c.bf16 %v743_v53, %v741_v56 }
 0x2bb   : > { %1247 = vmatprep.subr.msk.bf16.mxu0 %vm1246_vm10, %v1245_v57 }
 0x2bc   : > { %1250 = vmatpush1.bf16.msk.msra.mxu0 %vm1249_vm11, %v1248_v55 }
 0x2bd   : > { %1240 = vmatprep.subr.mxu0 %v1291_v0 }
 0x2bf   : > { %1220 = vmatmul.mubr.msk.f32.vlgmr.msra.gmra.mrb[4].mxu0 %vm747_vm12, %v746_v58 }
 0x2c0   : > { %1242 = vmatprep.mubr.msk.f32.mxu0 %vm1294_vm13, %v1291_v0 }
 0x392   : > { %v817_v59 = vpop.f32.mrb[4].mxu0 }
 0x393   : > { %v822_v60 = vadd.f32 %v817_v59, %v1383_v2  ;;  %v819_v61 = vpop.f32.mrb[5].mxu0 }
 0x394   : > { %v823_v62 = vadd.f32 %v819_v61, %v1381_v1 }
 0x396   : > { %v824_v63 = vadd.f32 %v823_v62, %v822_v60 }
 0x398   : > { %825 = vadd.xlane.f32.xlu1 %v824_v63 }
 0x425   : > { %v826_v4 = vpop.xlane.xlu1 %825 }
 0x426   : > { %1236 = vmatpush3.msra.mxu1 %v826_v4 }
 0x427   : > { %1238 = vmatmul.mubr.msk.f32.vlgmr.msra.gmra.mrb[4].mxu1 %vm458_vm0, %v827_v3 }
 0x428   : > { %1084 = vmatprep.mubr.f32.mxu1 %v1291_v0 }
 0x4fa   : > { %v897_v2 = vpop.f32.mrb[4].mxu1 }
 0x4fb   : > { %v901_v5 = vmul.f32 0.001953125, %v897_v2  ;;  %v1239_v1 = vpop.f32.mrb[5].mxu1 }
 0x4fd   : > { %904 = vperm.xlu1 %1264, %v901_v5  }
 0x501   : > { %997 = vperm.xlu1 %1264, %v994_v6  }
 0x57c   : > { %v905_v7 = vpop.permute.xlu1 %904 }
 0x57d   : > { %v907_v8 = vsub.f32 %v822_v60, %v905_v7  ;;  %v908_v9 = vsub.f32 %v823_v62, %v905_v7 }
 0x57f   : > { %v909_v10 = vmul.f32 %v907_v8, %v907_v8  ;;  %v910_v11 = vmul.f32 %v908_v9, %v908_v9 }
 0x580   : > { %v998_v20 = vpop.permute.xlu1 %997 }
 0x581   : > { %v911_v12 = vadd.f32 %v910_v11, %v909_v10 }
 0x583   : > { %912 = vadd.xlane.f32.xlu0 %v911_v12 }
 0x610   : > { %v913_v13 = vpop.xlane.xlu0 %912 }
 0x611   : > { %1241 = vmatpush3.msra.mxu0 %v913_v13 }
 0x612   : > { %1243 = vmatmul.mubr.msk.f32.vlgmr.msra.gmra.mrb[6].mxu0 %vm458_vm0, %v827_v3 }
 0x6e5   : > { %v980_v0 = vpop.f32.mrb[6].mxu0 }
 0x6e6   : > { %v984_v14 = vmul.f32 0.001953125, %v980_v0  ;;  %v1244_v15 = vpop.f32.mrb[7].mxu0 }
 0x6e8   : > { %v985_v16 = vadd.f32 1e-06, %v984_v14 }
 0x6ea   : > { %1273 = vrsqrt.f32 %v985_v16 }
 0x6f4   : > { %v1274_v17 = vpop.eup %1273 }
 0x6f5   : > { %989 = vperm.xlu1 %1264, %v1274_v17  }
 0x6f9   : > { %1005 = vperm.xlu1 %1264, %v1002_v18  }
 0x6fd   : > { %1014 = vperm.xlu1 %1264, %v1011_v19  }
 0x774   : > { %v990_v21 = vpop.permute.xlu1 %989 }
 0x775   : > { %v992_v22 = vmul.f32 %v990_v21, %v907_v8  ;;  %v993_v23 = vmul.f32 %v990_v21, %v908_v9 }
 0x777   : > { %v1000_v24 = vmul.f32 %v998_v20, %v992_v22  ;;  %v1001_v25 = vmul.f32 %v998_v20, %v993_v23 }
 0x778   : > { %v1006_v26 = vpop.permute.xlu1 %1005 }
 0x779   : > { %v1008_v27 = vadd.f32 %v1006_v26, %v1000_v24  ;;  %v1009_v28 = vadd.f32 %v1006_v26, %v1001_v25 }
 0x77b   : > { %1020 = vmatprep.subr.mxu1 %v1009_v28 }
 0x77c   : > { %1021 = vmatpush1.msra.mxu1 %v1008_v27  ;;  %v1015_v30 = vpop.permute.xlu1 %1014 }
 0x77d   : > { %1223 = vmatmul.mubr.msk.f32.vlgmr.msra.gmra.mrb[6].mxu1 %vm458_vm0, %v1010_v29 }
 0x850   : > { %v1086_v31 = vpop.f32.mrb[6].mxu1 }
 0x851   : > { %v1087_v32 = vadd.f32 %v1086_v31, %v1015_v30  ;;  %v1088_v33 = vpop.f32.mrb[7].mxu1 }
 0x852   : > { %v1089_v34 = vadd.f32 %v1088_v33, %v1015_v30 }
 0x853   : > { %v1224_v35 = vmul.f32 -1.442695, %v1087_v32 }
 0x854   : > { %v1093_v36 = vcombine.low %v1087_v32, %v1089_v34  ;;  %v1225_v37 = vmul.f32 -1.442695, %v1089_v34 }
 0x855   : > { %1275 = vpow2.f32 %v1224_v35 }
 0x856   : > { %1095 = vst [vmem:[%s448_s28] sm:$0xff] %v1093_v36  ;;  %1277 = vpow2.f32 %v1225_v37 }
 0x85f   : > { %v1276_v38 = vpop.eup %1275 }
 0x860   : > { %v1278_v39 = vpop.eup %1277  ;;  %v1102_v40 = vadd.f32 1.0, %v1276_v38 }
 0x861   : > { %v1103_v41 = vadd.f32 1.0, %v1278_v39 }
 0x862   : > { %1279 = vrcp.f32 %v1102_v40 }
 0x863   : > { %1281 = vrcp.f32 %v1103_v41 }
 0x86c   : > { %v1280_v42 = vpop.eup %1279 }
 0x86d   : > { %v1282_v43 = vpop.eup %1281  ;;  %v1108_v44 = vmul.f32 %v1280_v42, %v1087_v32 }
 0x86e   : > { %v1109_v45 = vmul.f32 %v1282_v43, %v1089_v34 }
 0x870   : > { %v1112_v46 = vcombine.high %v1108_v44, %v1109_v45 }
 0x872   : > { %1114 = vst [vmem:[%s453_s30] sm:$0xff] %v1112_v46 }
 0x873 PF: > { %s24_s25 = sadd.s32 1, %s1289_s25  }
 0x874   : > { %p21_p4 = scmp.ge.s32.totalorder %s24_s25, 4  }
 0x876   :  { %23 = sbr.rel (!%p21_p4) target bundleno = 1 (0x1), region = 110 }

// kernel: reverse.0
= control target key start
LH: loop header
LB: loop body
LE: loop exit
PB: predicated region body
PF: predicated region fallthrough
CT: control target
= control target key end

     0   :  { %v71_v3 = vlaneseq  ;;  %v64_v9 = vld [vmem:[#allocation0 + $0x7] ss:$-1 sm:$0xff]  ;;  %v78_v12 = vld [vmem:[#allocation0 + $0x17] ss:$-1 sm:$0xff]  ;;  %s329_s0 = inlined_call_operand.vmem [shape: f32[2,4,16,7], index: 0, kind: input, shape index: {}]   ;;  %s330_s1 = inlined_call_operand.vmem [shape: f32[2,4,16,7], index: 1, kind: output, shape index: {}]  }
   0x1   :  { %v44_v0 = vld [vmem:[%s329_s0] sm:$0xff]  ;;  %v46_v1 = vld [vmem:[%s329_s0 + $0x8] sm:$0xff]  ;;  %v48_v2 = vld [vmem:[%s329_s0 + $0x10] sm:$0xff]  ;;  %v65_v10 = vrot.slane %v64_v9, 1  ;;  %v79_v14 = vrot.slane %v78_v12, 1 }
   0x2   :  { %45 = vst [vmem:[#allocation0 + $0x8] sm:$0xff] %v44_v0  ;;  %47 = vst [vmem:[#allocation0 + $0x18] sm:$0xff] %v46_v1  ;;  %v50_v4 = vld [vmem:[%s329_s0 + $0x18] sm:$0xff]  ;;  %v52_v5 = vld [vmem:[%s329_s0 + $0x20] sm:$0xff]  ;;  %v72_v11 = vshrl.u32 %v71_v3, 7 }
   0x3   :  { %49 = vst [vmem:[#allocation0 + $0x28] sm:$0xff] %v48_v2  ;;  %v54_v6 = vld [vmem:[%s329_s0 + $0x28] sm:$0xff]  ;;  %51 = vst [vmem:[#allocation0 + $0x38] sm:$0xff] %v50_v4  ;;  %v56_v7 = vld [vmem:[%s329_s0 + $0x30] sm:$0xff] }
   0x4   :  { %53 = vst [vmem:[#allocation0 + $0x48] sm:$0xff] %v52_v5  ;;  %55 = vst [vmem:[#allocation0 + $0x58] sm:$0xff] %v54_v6  ;;  %v58_v8 = vld [vmem:[%s329_s0 + $0x38] sm:$0xff]  ;;  %v92_v13 = vld [vmem:[#allocation0 + $0x27] ss:$-1 sm:$0xff]  ;;  %vm73_vm0 = vcmp.lt.s32.totalorder %v72_v11, 7 }
   0x5   :  { %57 = vst [vmem:[#allocation0 + $0x68] sm:$0xff] %v56_v7  ;;  %59 = vst [vmem:[#allocation0 + $0x78] sm:$0xff] %v58_v8  ;;  %v93_v15 = vrot.slane %v92_v13, 1  ;;  %v106_v16 = vld [vmem:[#allocation0 + $0x37] ss:$-1 sm:$0xff] }
   0x6   :  { %66 = vst [vmem:[#allocation1] sm:$0xff] %v65_v10  ;;  %v107_v17 = vrot.slane %v106_v16, 1  ;;  %v120_v18 = vld [vmem:[#allocation0 + $0x47] ss:$-1 sm:$0xff]  ;;  %v134_v19 = vld [vmem:[#allocation0 + $0x57] ss:$-1 sm:$0xff] }
   0x7   :  { %80 = vst [vmem:[#allocation1 + $0x8] sm:$0xff] %v79_v14  ;;  %94 = vst [vmem:[#allocation1 + $0x10] sm:$0xff] %v93_v15  ;;  %v121_v20 = vrot.slane %v120_v18, 1  ;;  %v135_v21 = vrot.slane %v134_v19, 1  ;;  %v148_v22 = vld [vmem:[#allocation0 + $0x67] ss:$-1 sm:$0xff] }
   0x8   :  { %v162_v23 = vld [vmem:[#allocation0 + $0x77] ss:$-1 sm:$0xff]  ;;  %108 = vst [vmem:[#allocation1 + $0x18] sm:$0xff] %v107_v17  ;;  %v149_v24 = vrot.slane %v148_v22, 1 }
   0x9   :  { %v163_v25 = vrot.slane %v162_v23, 1  ;;  %v69_v26 = vld [vmem:[#allocation0 + $0xf] ss:$-1 sm:$0xff]  ;;  %v83_v27 = vld [vmem:[#allocation0 + $0x1f] ss:$-1 sm:$0xff]  ;;  %122 = vst [vmem:[#allocation1 + $0x20] sm:$0xff] %v121_v20 }
   0xa   :  { %v97_v28 = vld [vmem:[#allocation0 + $0x2f] ss:$-1 sm:$0xff]  ;;  %136 = vst [vmem:[#allocation1 + $0x28] sm:$0xff] %v135_v21  ;;  %v70_v29 = vrot.slane %v69_v26, 1  ;;  %v84_v30 = vrot.slane %v83_v27, 1  ;;  %150 = vst [vmem:[#allocation1 + $0x30] sm:$0xff] %v149_v24 }
   0xb   :  { %v98_v31 = vrot.slane %v97_v28, 1  ;;  %v111_v32 = vld [vmem:[#allocation0 + $0x3f] ss:$-1 sm:$0xff]  ;;  %164 = vst [vmem:[#allocation1 + $0x38] sm:$0xff] %v163_v25  ;;  %v125_v34 = vld [vmem:[#allocation0 + $0x4f] ss:$-1 sm:$0xff] }
   0xc   :  { %v112_v33 = vrot.slane %v111_v32, 1  ;;  %v139_v35 = vld [vmem:[#allocation0 + $0x5f] ss:$-1 sm:$0xff]  ;;  %74 = vst.msk [vmem:[#allocation1] sm:$0xff] %vm73_vm0, %v70_v29  ;;  %88 = vst.msk [vmem:[#allocation1 + $0x8] sm:$0xff] %vm73_vm0, %v84_v30  ;;  %v126_v36 = vrot.slane %v125_v34, 1 }
   0xd   :  { %102 = vst.msk [vmem:[#allocation1 + $0x10] sm:$0xff] %vm73_vm0, %v98_v31  ;;  %v140_v37 = vrot.slane %v139_v35, 1  ;;  %v153_v38 = vld [vmem:[#allocation0 + $0x6f] ss:$-1 sm:$0xff]  ;;  %v167_v39 = vld [vmem:[#allocation0 + $0x7f] ss:$-1 sm:$0xff] }
   0xe   :  { %116 = vst.msk [vmem:[#allocation1 + $0x18] sm:$0xff] %vm73_vm0, %v112_v33  ;;  %v154_v40 = vrot.slane %v153_v38, 1  ;;  %v168_v41 = vrot.slane %v167_v39, 1  ;;  %130 = vst.msk [vmem:[#allocation1 + $0x20] sm:$0xff] %vm73_vm0, %v126_v36 }
   0xf   :  { %144 = vst.msk [vmem:[#allocation1 + $0x28] sm:$0xff] %vm73_vm0, %v140_v37 }
  0x10   :  { %158 = vst.msk [vmem:[#allocation1 + $0x30] sm:$0xff] %vm73_vm0, %v154_v40  ;;  %172 = vst.msk [vmem:[#allocation1 + $0x38] sm:$0xff] %vm73_vm0, %v168_v41 }
  0x13   :  { %v214_v42 = vld [vmem:[#allocation1] sm:$0xff]  ;;  %v216_v43 = vld [vmem:[#allocation1 + $0x8] sm:$0xff] }
  0x14   :  { %v218_v44 = vld [vmem:[#allocation1 + $0x10] sm:$0xff]  ;;  %215 = vst [vmem:[%s330_s1] sm:$0xff] %v214_v42  ;;  %217 = vst [vmem:[%s330_s1 + $0x8] sm:$0xff] %v216_v43 }
  0x15   :  { %219 = vst [vmem:[%s330_s1 + $0x10] sm:$0xff] %v218_v44  ;;  %v220_v45 = vld [vmem:[#allocation1 + $0x18] sm:$0xff]  ;;  %v222_v46 = vld [vmem:[#allocation1 + $0x20] sm:$0xff] }
  0x16   :  { %221 = vst [vmem:[%s330_s1 + $0x18] sm:$0xff] %v220_v45  ;;  %v224_v47 = vld [vmem:[#allocation1 + $0x28] sm:$0xff]  ;;  %223 = vst [vmem:[%s330_s1 + $0x20] sm:$0xff] %v222_v46 }
  0x17   :  { %225 = vst [vmem:[%s330_s1 + $0x28] sm:$0xff] %v224_v47  ;;  %v226_v48 = vld [vmem:[#allocation1 + $0x30] sm:$0xff]  ;;  %v228_v49 = vld [vmem:[#allocation1 + $0x38] sm:$0xff] }
  0x18   :  { %227 = vst [vmem:[%s330_s1 + $0x30] sm:$0xff] %v226_v48  ;;  %229 = vst [vmem:[%s330_s1 + $0x38] sm:$0xff] %v228_v49 }

// kernel: res_four11_forward.4
= control target key start
LH: loop header
LB: loop body
LE: loop exit
PB: predicated region body
PF: predicated region fallthrough
CT: control target
= control target key end

     0   :  { %s1106_s18 = smov 0   ;;  %s1108_s19 = smov 0   ;;  %s1229_s0 = inlined_call_operand.vmem [shape: f32[2,8,144], index: 0, kind: input, shape index: {}]   ;;  %s1230_s1 = inlined_call_operand.vmem [shape: f32[8,8], index: 1, kind: input, shape index: {}]   ;;  %s1231_s2 = inlined_call_operand.vmem [shape: f32[8,1], index: 2, kind: input, shape index: {}]   ;;  %s1232_s3 = inlined_call_operand.vmem [shape: f32[8,8], index: 3, kind: input, shape index: {}]   ;;  %s1233_s4 = inlined_call_operand.vmem [shape: f32[8,1], index: 4, kind: input, shape index: {}]   ;;  %s1234_s5 = inlined_call_operand.vmem [shape: f32[2,8,144], index: 5, kind: output, shape index: {}]  }
   0x1   :  { %s1110_s20 = smov 0  }
   0x2 LB: > { %s27_s21 = sadd.s32 1, %s1062_s19  ;;  %p968_p0 = scmp.ge.s32.totalorder %s1066_s20, 1  ;;  %s1066_s20 = sphi %s1110_s20, %s15_s20   ;;  %s1062_s19 = sphi %s1108_s19, %s1236_s19   ;;  %s1058_s18 = sphi %s1106_s18, %s1235_s18  }
   0x3   : > { %p29_p1 = scmp.ge.s32.totalorder %s27_s21, 2  ;;  %p208_p2 = scmp.lt.s32.totalorder %s1066_s20, 3 }
   0x5   : > { %s1238_s21 = smov (%p29_p1, %s27_s21), 0  ;;  %p209_p3 = pnand %p968_p0, %p208_p2 }
   0x6   : > { %p245_p4 = scmp.lt.s32.totalorder (!%p209_p3), %s1058_s18, 1  ;;  %v267_v0 = vld [vmem:[%s1231_s2] sm:$0xff] (!%p209_p3)  ;;  %v1068_v1 = vmov (!%p209_p3), 0.0   ;;  %v1069_v2 = vmov (!%p209_p3), 0   ;;  %vm273_vm0 = vcmask (!%p209_p3), 64512  }
   0x7   : > { %212 = sbr.rel (%p209_p3) target bundleno = 551 (0x227), region = 40  ;;  %341 = vmatprep.mubr.f32.mxu0 (!%p209_p3), %v1068_v1  ;;  %1035 = vset.pattern.permute.xlu0 (!%p209_p3), %v1069_v2  ;;  %v355_v3 = vld [vmem:[%s1233_s4] sm:$0xff] (!%p209_p3)  ;;  %v1070_v42 = vmov (!%p209_p3), 683565275   ;;  %v1071_v46 = vmov (!%p209_p3), 2475754826  }
   0x8   : > { %270 = vperm.xlu0 (!%p209_p3), %1035, %v267_v0   ;;  %428 = vmatprep.mubr.f32.mxu1 (!%p209_p3), %v1068_v1  ;;  %v266_v6 = vld [vmem:[%s1230_s1] sm:$0xff] (!%p209_p3)  ;;  %v1072_v48 = vmov (!%p209_p3), 2131351028   ;;  %v1073_v50 = vmov (!%p209_p3), 2102212464  }
   0x9   : > { %v354_v15 = vld [vmem:[%s1232_s3] sm:$0xff] (!%p209_p3)  ;;  %v1074_v52 = vmov (!%p209_p3), 920167782   ;;  %v1075_v59 = vmov (!%p209_p3), 1326507024  }
   0xc   : > { %358 = vperm.xlu0 (!%p209_p3), %1035, %v355_v3  }
   0xe   : > { %s1240_s18 = smov (!%p245_p4, %s1058_s18), 1 }
   0xf   : > { %s993_s26 = sshll.u32 %s1240_s18, 4 }
  0x10   : > { %s252_s29 = scalar_lea.vmem %s1229_s0, %s993_s26  ;;  %s262_s11 = scalar_lea.vmem %s1234_s5, %s993_s26 }
  0x11   : > { %v265_v4 = vld [vmem:[%s252_s29 + $0x8] sm:$0xff]  ;;  %v264_v5 = vld [vmem:[%s252_s29] sm:$0xff] }
  0x12   : > { %277 = vmatprep.subr.mxu0 %v265_v4 }
  0x13   : > { %278 = vmatpush1.msra.mxu0 %v264_v5 }
  0x14   : > { %973 = vmatmul.mubr.msk.f32.vlgmr.msra.gmra.mrb[0].mxu0 %vm273_vm0, %v266_v6 }
  0x87   : > { %v271_v7 = vpop.permute.xlu0 %270 }
  0x8b   : > { %v359_v17 = vpop.permute.xlu0 %358 }
  0xe7   : > { %v343_v8 = vpop.f32.mrb[0].mxu0 }
  0xe8   : > { %v344_v9 = vadd.f32 %v343_v8, %v271_v7  ;;  %v345_v10 = vpop.f32.mrb[1].mxu0 }
  0xe9   : > { %v346_v11 = vadd.f32 %v345_v10, %v271_v7 }
  0xea   : > { %v350_v12 = vmul.f32 0.1, %v344_v9  ;;  %vm348_vm2 = vcmp.ge.f32.partialorder %v344_v9, 0.0 }
  0xeb   : > { %vm349_vm1 = vcmp.ge.f32.partialorder %v346_v11, 0.0  ;;  %v351_v13 = vmul.f32 0.1, %v346_v11 }
  0xec   : > { %v352_v16 = vsel %vm348_vm2, %v344_v9, %v350_v12 }
  0xed   : > { %v353_v14 = vsel %vm349_vm1, %v346_v11, %v351_v13 }
  0xee   : > { %364 = vmatprep.subr.mxu1 %v353_v14 }
  0xef   : > { %365 = vmatpush1.msra.mxu1 %v352_v16 }
  0xf0   : > { %974 = vmatmul.mubr.msk.f32.vlgmr.msra.gmra.mrb[0].mxu1 %vm273_vm0, %v354_v15 }
 0x1c3   : > { %v430_v18 = vpop.f32.mrb[0].mxu1 }
 0x1c4   : > { %v1146_v19 = vadd.f32 %v430_v18, %v359_v17  ;;  %v432_v20 = vpop.f32.mrb[1].mxu1 }
 0x1c5   : > { %v1148_v21 = vadd.f32 %v432_v20, %v359_v17 }
 0x1c6   : > { %v435_v22 = vand.u32 2147483647, %v1146_v19  ;;  %v438_v23 = vand.u32 2139095040, %v1146_v19  ;;  %vm437_vm1 = vcmp.lt.s32.totalorder %v1146_v19, 0 }
 0x1c7   : > { %v541_v24 = vand.u32 2139095040, %v1148_v21  ;;  %v538_v27 = vand.u32 2147483647, %v1148_v21 }
 0x1c8   : > { %v439_v25 = vshrl.u32 %v438_v23, 23  ;;  %v442_v26 = vand.u32 8388607, %v435_v22  ;;  %vm436_vm2 = vcmp.le.f32.partialorder %v435_v22, 0.7853982 }
 0x1c9   : > { %v542_v28 = vshrl.u32 %v541_v24, 23  ;;  %v1158_v33 = vand.u32 8388607, %v538_v27 }
 0x1ca   : > { %v975_v29 = vadd.s32 4294967169, %v439_v25  ;;  %v443_v32 = vor.u32 8388608, %v442_v26 }
 0x1cb   : > { %v979_v30 = vadd.s32 4294967169, %v542_v28  ;;  %v546_v40 = vor.u32 8388608, %v1158_v33 }
 0x1cc   : > { %v445_v31 = vadd.s32 1, %v975_v29  ;;  %v1160_v39 = vshll.u32 %v443_v32, 8 }
 0x1cd   : > { %v548_v34 = vadd.s32 1, %v979_v30 }
 0x1ce   : > { %vm446_vm3 = vcmp.gt.s32.totalorder %v445_v31, 0 }
 0x1cf   : > { %v447_v35 = vsel %vm446_vm3, %v445_v31, 0  ;;  %vm549_vm4 = vcmp.gt.s32.totalorder %v548_v34, 0  ;;  %vm540_vm3 = vcmp.lt.s32.totalorder %v1148_v21, 0 }
 0x1d0   : > { %v448_v36 = vshrl.u32 %v447_v35, 5  ;;  %v449_v37 = vand.u32 31, %v447_v35  ;;  %v550_v38 = vsel %vm549_vm4, %v548_v34, 0  ;;  %v586_v34 = vshll.u32 %v546_v40, 8 }
 0x1d1   : > { %v1163_v44 = vshrl.u32 %v550_v38, 5  ;;  %v552_v45 = vand.u32 31, %v550_v38  ;;  %vm539_vm4 = vcmp.le.f32.partialorder %v538_v27, 0.7853982 }
 0x1d2   : > { %v450_v41 = vsub.s32 32, %v449_v37  ;;  %v452_v43 = vshll.u32 %v1070_v42, %v449_v37  ;;  %v455_v47 = vshll.u32 %v1071_v46, %v449_v37  ;;  %v458_v49 = vshll.u32 %v1072_v48, %v449_v37 }
 0x1d3   : > { %v461_v51 = vshll.u32 %v1073_v50, %v449_v37  ;;  %v464_v53 = vshll.u32 %v1074_v52, %v449_v37  ;;  %vm467_vm5 = vcmp.lt.s32.totalorder %v448_v36, 1  ;;  %vm468_vm6 = vcmp.lt.s32.totalorder %v448_v36, 2 }
 0x1d4   : > { %v453_v54 = vshrl.u32 %v1071_v46, %v450_v41  ;;  %v456_v55 = vshrl.u32 %v1072_v48, %v450_v41  ;;  %v459_v56 = vshrl.u32 %v1073_v50, %v450_v41  ;;  %v451_v57 = vshrl.u32 %v1070_v42, %v450_v41 }
 0x1d5   : > { %v462_v58 = vshrl.u32 %v1074_v52, %v450_v41  ;;  %v465_v60 = vshrl.u32 %v1075_v59, %v450_v41  ;;  %v553_v0 = vsub.s32 32, %v552_v45  ;;  %vm469_vm7 = vcmp.lt.s32.totalorder %v448_v36, 3 }
 0x1d6   : > { %v454_v61 = vor.u32 %v453_v54, %v452_v43  ;;  %v457_v62 = vor.u32 %v456_v55, %v455_v47  ;;  %v460_v63 = vor.u32 %v459_v56, %v458_v49  ;;  %vm470_vm8 = vcmp.lt.s32.totalorder %v448_v36, 4 }
 0x1d7   : > { %v463_v1 = vor.u32 %v462_v58, %v461_v51  ;;  %v466_v2 = vor.u32 %v465_v60, %v464_v53  ;;  %v555_v10 = vshll.u32 %v1070_v42, %v552_v45  ;;  %v556_v13 = vshrl.u32 %v1071_v46, %v553_v0 }
 0x1d8   : > { %v471_v3 = vsel %vm467_vm5, %v451_v57, %v454_v61  ;;  %v472_v4 = vsel %vm470_vm8, %v460_v63, 2102212464  ;;  %v475_v5 = vsel %vm467_vm5, %v454_v61, %v457_v62  ;;  %v479_v6 = vsel %vm467_vm5, %v457_v62, %v460_v63 }
 0x1d9   : > { %v473_v7 = vsel %vm469_vm7, %v457_v62, %v472_v4  ;;  %v476_v8 = vsel %vm470_vm8, %v463_v1, 920167782  ;;  %v480_v9 = vsel %vm470_vm8, %v466_v2, 1326507024  ;;  %v558_v14 = vshll.u32 %v1071_v46, %v552_v45 }
 0x1da   : > { %v477_v11 = vsel %vm469_vm7, %v460_v63, %v476_v8  ;;  %v481_v12 = vsel %vm469_vm7, %v463_v1, %v480_v9  ;;  %v474_v15 = vsel %vm468_vm6, %v471_v3, %v473_v7  ;;  %v559_v18 = vshrl.u32 %v1072_v48, %v553_v0 }
 0x1db   : > { %v478_v16 = vsel %vm468_vm6, %v475_v5, %v477_v11  ;;  %v482_v17 = vsel %vm468_vm6, %v479_v6, %v481_v12  ;;  %v557_v26 = vor.u32 %v556_v13, %v555_v10  ;;  %v561_v29 = vshll.u32 %v1072_v48, %v552_v45 }
 0x1dc   : > { %v1172_v20 = vmul.u32.u64.low %v1160_v39, %v482_v17  ;;  %v1173_v23 = vmul.u32.u64.high %v1160_v39, %v482_v17, %v1172_v20  ;;  %v1176_v24 = vmul.u32.u64.low %v1160_v39, %v478_v16  ;;  %v1177_v25 = vmul.u32.u64.high %v1160_v39, %v478_v16, %v1176_v24 }
 0x1dd   : > { %v560_v28 = vor.u32 %v559_v18, %v558_v14  ;;  %v562_v30 = vshrl.u32 %v1073_v50, %v553_v0  ;;  %v564_v31 = vshll.u32 %v1073_v50, %v552_v45  ;;  %v565_v32 = vshrl.u32 %v1074_v52, %v553_v0 }
 0x1de   : > { %v568_v33 = vshrl.u32 %v1075_v59, %v553_v0  ;;  %v490_v35 = vmul.u32 %v1160_v39, %v474_v15  ;;  %v554_v36 = vshrl.u32 %v1070_v42, %v553_v0  ;;  %v567_v38 = vshll.u32 %v1074_v52, %v552_v45 }
 0x1df   : > { %v563_v37 = vor.u32 %v562_v30, %v561_v29  ;;  %vm492_vm9 = vc.u32 %v1173_v23, %v1176_v24  ;;  %v493_v41 = vadd.s32 1, %v1177_v25  ;;  %v566_v43 = vor.u32 %v565_v32, %v564_v31 }
 0x1e0   : > { %vm570_vm10 = vcmp.lt.s32.totalorder %v1163_v44, 1  ;;  %v569_v46 = vor.u32 %v568_v33, %v567_v38  ;;  %vm572_vm11 = vcmp.lt.s32.totalorder %v1163_v44, 3  ;;  %vm573_vm12 = vcmp.lt.s32.totalorder %v1163_v44, 4 }
 0x1e1   : > { %v578_v47 = vsel %vm570_vm10, %v557_v26, %v560_v28  ;;  %v494_v40 = vsel %vm492_vm9, %v493_v41, %v1177_v25  ;;  %v575_v48 = vsel %vm573_vm12, %v563_v37, 2102212464  ;;  %v579_v39 = vsel %vm573_vm12, %v566_v43, 920167782 }
 0x1e2   : > { %v582_v42 = vsel %vm570_vm10, %v560_v28, %v563_v37  ;;  %v495_v49 = vadd.s32 %v494_v40, %v490_v35  ;;  %vm571_vm13 = vcmp.lt.s32.totalorder %v1163_v44, 2  ;;  %v580_v45 = vsel %vm572_vm11, %v563_v37, %v579_v39 }
 0x1e3   : > { %v583_v50 = vsel %vm573_vm12, %v569_v46, 1326507024  ;;  %v574_v51 = vsel %vm570_vm10, %v554_v36, %v557_v26  ;;  %v576_v52 = vsel %vm572_vm11, %v560_v28, %v575_v48  ;;  %v581_v53 = vsel %vm571_vm13, %v578_v47, %v580_v45 }
 0x1e4   : > { %v584_v54 = vsel %vm572_vm11, %v566_v43, %v583_v50  ;;  %v496_v55 = vadd.s32 536870912, %v495_v49  ;;  %v1187_v57 = vmul.u32.u64.low %v586_v34, %v581_v53  ;;  %v1188_v58 = vmul.u32.u64.high %v586_v34, %v581_v53, %v1187_v57 }
 0x1e5   : > { %v585_v56 = vsel %vm571_vm13, %v582_v42, %v584_v54  ;;  %v577_v62 = vsel %vm571_vm13, %v574_v51, %v576_v52  ;;  %v491_v14 = vadd.s32 %v1176_v24, %v1173_v23  ;;  %vm527_vm11 = vweird.f32 %v1146_v19 }
 0x1e6   : > { %v1190_v59 = vmul.u32.u64.low %v586_v34, %v585_v56  ;;  %v1191_v60 = vmul.u32.u64.high %v586_v34, %v585_v56, %v1190_v59  ;;  %v497_v61 = vshrl.u32 %v496_v55, 30  ;;  %v596_v0 = vadd.s32 1, %v1188_v58 }
 0x1e7   : > { %v593_v44 = vmul.u32 %v586_v34, %v577_v62  ;;  %vm871_vm12 = vcmask 1043456  }
 0x1e8   : > { %v498_v63 = vshll.u32 %v497_v61, 30  ;;  %vm595_vm14 = vc.u32 %v1191_v60, %v1187_v57  ;;  %v594_v35 = vadd.s32 %v1187_v57, %v1191_v60  ;;  %v521_v24 = vsub.s32 4, %v497_v61 }
 0x1e9   : > { %v597_v2 = vsel %vm595_vm14, %v596_v0, %v1188_v58 }
 0x1ea   : > { %v499_v1 = vsub.s32 %v495_v49, %v498_v63  ;;  %v598_v3 = vadd.s32 %v597_v2, %v593_v44  ;;  %v522_v39 = vsel %vm437_vm1, %v521_v24, %v497_v61 }
 0x1eb   : > { %v524_v45 = vsel %vm436_vm2, 0, %v522_v39 }
 0x1ec   : > { %v501_v4 = vsub.s32 0, %v499_v1  ;;  %v599_v5 = vadd.s32 536870912, %v598_v3  ;;  %v742_v54 = vadd.s32 3, %v524_v45  ;;  %v528_v57 = vand.u32 3, %v524_v45 }
 0x1ee   : > { %v976_v6 = vmin.u32 %v501_v4, %v499_v1  ;;  %v600_v7 = vshrl.u32 %v599_v5, 30  ;;  %v743_v58 = vand.u32 3, %v742_v54  ;;  %vm530_vm5 = vcmp.eq.s32.totalorder %v528_v57, 0 }
 0x1ef   : > { %vm533_vm6 = vcmp.eq.s32.totalorder %v528_v57, 2  ;;  %vm529_vm9 = vcmp.lt.s32.totalorder %v528_v57, 2 }
 0x1f0   : > { %v503_v8 = vclz %v976_v6  ;;  %v601_v9 = vshll.u32 %v600_v7, 30  ;;  %v624_v53 = vsub.s32 4, %v600_v7  ;;  %vm748_vm7 = vcmp.eq.s32.totalorder %v743_v58, 2 }
 0x1f1   : > { %vm745_vm8 = vcmp.eq.s32.totalorder %v743_v58, 0  ;;  %vm744_vm10 = vcmp.lt.s32.totalorder %v743_v58, 2 }
 0x1f2   : > { %v977_v10 = vadd.s32 4294967294, %v503_v8  ;;  %v602_v11 = vsub.s32 %v598_v3, %v601_v9  ;;  %v625_v56 = vsel %vm540_vm3, %v624_v53, %v600_v7 }
 0x1f3   : > { %v627_v61 = vsel %vm539_vm4, 0, %v625_v56 }
 0x1f4   : > { %vm978_vm15 = vcmp.lt.s32.totalorder %v977_v10, 0  ;;  %v604_v13 = vsub.s32 0, %v602_v11  ;;  %v846_v27 = vadd.s32 3, %v627_v61  ;;  %v631_v8 = vand.u32 3, %v627_v61 }
 0x1f5   : > { %v506_v12 = vsel %vm978_vm15, 0, %v977_v10 }
 0x1f6   : > { %v507_v15 = vsub.s32 32, %v506_v12  ;;  %v511_v16 = vsub.s32 4294967266, %v506_v12  ;;  %v980_v17 = vmin.u32 %v604_v13, %v602_v11  ;;  %v508_v18 = vshll.u32 %v499_v1, %v506_v12 }
 0x1f7   : > { %vm632_vm13 = vcmp.lt.s32.totalorder %v631_v8, 2  ;;  %vm636_vm14 = vcmp.eq.s32.totalorder %v631_v8, 2 }
 0x1f8   : > { %v509_v20 = vshrl.u32 %v491_v14, %v507_v15  ;;  %v512_v25 = vadd.s32 127, %v511_v16  ;;  %v606_v26 = vclz %v980_v17 }
 0x1fa   : > { %v510_v28 = vor.u32 %v509_v20, %v508_v18  ;;  %v513_v29 = vshll.u32 %v512_v25, 23  ;;  %v981_v30 = vadd.s32 4294967294, %v606_v26 }
 0x1fc   : > { %v514_v31 = vor.u32 4788187, %v513_v29  ;;  %vm982_vm0 = vcmp.lt.s32.totalorder %v981_v30, 0  ;;  %v517_v33 = vcvt.s32.f32 %v510_v28 }
 0x1fd   : > { %v609_v34 = vsel %vm982_vm0, 0, %v981_v30  ;;  %vm633_vm0 = vcmp.eq.s32.totalorder %v631_v8, 0 }
 0x1fe   : > { %v515_v32 = vand.u32 2147483647, %v514_v31  ;;  %v610_v36 = vsub.s32 32, %v609_v34  ;;  %v614_v37 = vsub.s32 4294967266, %v609_v34  ;;  %v611_v38 = vshll.u32 %v602_v11, %v609_v34 }
 0x1ff   : > { %v847_v11 = vand.u32 3, %v846_v27 }
 0x200   : > { %v518_v23 = vmul.f32 %v517_v33, %v515_v32  ;;  %v612_v41 = vshrl.u32 %v594_v35, %v610_v36  ;;  %v615_v43 = vadd.s32 127, %v614_v37 }
 0x201   : > { %vm852_vm15 = vcmp.eq.s32.totalorder %v847_v11, 2 }
 0x202   : > { %v519_v46 = vxor.u32 2147483648, %v518_v23  ;;  %v613_v47 = vor.u32 %v612_v41, %v611_v38  ;;  %v616_v40 = vshll.u32 %v615_v43, 23 }
 0x204   : > { %v520_v48 = vsel %vm437_vm1, %v519_v46, %v518_v23  ;;  %v617_v49 = vor.u32 4788187, %v616_v40  ;;  %v620_v51 = vcvt.s32.f32 %v613_v47  ;;  %vm849_vm1 = vcmp.eq.s32.totalorder %v847_v11, 0 }
 0x205   : > { %v523_v42 = vsel %vm436_vm2, %v1146_v19, %v520_v48  ;;  %vm848_vm2 = vcmp.lt.s32.totalorder %v847_v11, 2 }
 0x206   : > { %1036 = vcosq.f32 %v523_v42  ;;  %v618_v50 = vand.u32 2147483647, %v617_v49 }
 0x207   : > { %1038 = vsinq.f32 %v523_v42 }
 0x208   : > { %v621_v52 = vmul.f32 %v620_v51, %v618_v50 }
 0x20a   : > { %v622_v55 = vxor.u32 2147483648, %v621_v52 }
 0x20c   : > { %v623_v22 = vsel %vm540_vm3, %v622_v55, %v621_v52  ;;  %vm630_vm3 = vweird.f32 %v1148_v21 }
 0x20d   : > { %v626_v59 = vsel %vm539_vm4, %v1148_v21, %v623_v22  ;;  %vm875_vm4 = vcmask 130048  }
 0x20e   : > { %1040 = vcosq.f32 %v626_v59 }
 0x20f   : > { %1042 = vsinq.f32 %v626_v59 }
 0x210   : > { %v1037_v60 = vpop.eup %1036 }
 0x211   : > { %v1039_v62 = vpop.eup %1038  ;;  %v534_v63 = vxor.u32 2147483648, %v1037_v60 }
 0x212   : > { %v531_v0 = vxor.u32 2147483648, %v1039_v62 }
 0x213   : > { %v535_v44 = vsel %vm533_vm6, %v534_v63, %v1039_v62  ;;  %v750_v1 = vsel %vm748_vm7, %v534_v63, %v1039_v62 }
 0x214   : > { %v532_v2 = vsel %vm530_vm5, %v1037_v60, %v531_v0  ;;  %v747_v3 = vsel %vm745_vm8, %v1037_v60, %v531_v0 }
 0x215   : > { %v536_v4 = vsel %vm529_vm9, %v532_v2, %v535_v44  ;;  %v751_v5 = vsel %vm744_vm10, %v747_v3, %v750_v1 }
 0x216   : > { %v537_v6 = vsel %vm527_vm11, nan, %v536_v4  ;;  %v752_v7 = vsel %vm527_vm11, nan, %v751_v5 }
 0x217   : > { %v643_v9 = vrot.slane %v537_v6, 4  ;;  %v859_v10 = vrot.slane %v752_v7, 4 }
 0x218   : > { %v1041_v12 = vpop.eup %1040 }
 0x219   : > { %v863_v13 = vmul.f32 %v859_v10, %v1146_v19  ;;  %v1043_v14 = vpop.eup %1042  ;;  %v637_v15 = vxor.u32 2147483648, %v1041_v12  ;;  %v647_v16 = vmul.f32 %v643_v9, %v1146_v19 }
 0x21a   : > { %v634_v18 = vxor.u32 2147483648, %v1043_v14 }
 0x21b   : > { %v867_v17 = vrot.slane %v863_v13, 4  ;;  %v638_v20 = vsel %vm636_vm14, %v637_v15, %v1043_v14  ;;  %v854_v25 = vsel %vm852_vm15, %v637_v15, %v1043_v14 }
 0x21c   : > { %v635_v28 = vsel %vm633_vm0, %v1041_v12, %v634_v18  ;;  %v851_v29 = vsel %vm849_vm1, %v1041_v12, %v634_v18 }
 0x21d   : > { %v872_v26 = vsel %vm871_vm12, %v647_v16, %v867_v17  ;;  %v639_v30 = vsel %vm632_vm13, %v635_v28, %v638_v20  ;;  %v855_v31 = vsel %vm848_vm2, %v851_v29, %v854_v25 }
 0x21e   : > { %874 = vst [vmem:[%s262_s11] sm:$0xff] %v872_v26  ;;  %v640_v32 = vsel %vm630_vm3, nan, %v639_v30  ;;  %v856_v19 = vsel %vm630_vm3, nan, %v855_v31 }
 0x21f   : > { %v644_v33 = vrot.slane %v640_v32, 4  ;;  %v860_v34 = vrot.slane %v856_v19, 4 }
 0x221   : > { %v864_v35 = vmul.f32 %v860_v34, %v1148_v21  ;;  %v648_v36 = vmul.f32 %v644_v33, %v1148_v21 }
 0x223   : > { %v868_v37 = vrot.slane %v864_v35, 4 }
 0x225   : > { %v873_v23 = vsel %vm871_vm12, %v648_v36, %v868_v37 }
 0x226   : > { %876 = vst.msk [vmem:[%s262_s11 + $0x8] sm:$0xff] %vm875_vm4, %v873_v23 }
 0x227 PF: > { %s15_s20 = sadd.s32 1, %s1066_s20   ;;  %s1235_s18 = smov %s1062_s19 }
 0x228   : > { %p12_p5 = scmp.ge.s32.totalorder %s15_s20, 4   ;;  %s1236_s19 = smov %s1238_s21 }
 0x22a   :  { %14 = sbr.rel (!%p12_p5) target bundleno = 2 (0x2), region = 70 }

// kernel: res_four11_forward.5
= control target key start
LH: loop header
LB: loop body
LE: loop exit
PB: predicated region body
PF: predicated region fallthrough
CT: control target
= control target key end

     0   :  { %s2362_s0 = inlined_call_operand.vmem [shape: f32[2,4,256], index: 0, kind: input, shape index: {}]   ;;  %s2363_s1 = inlined_call_operand.vmem [shape: f32[2,4,256], index: 1, kind: input, shape index: {}]   ;;  %s2364_s2 = inlined_call_operand.vmem [shape: f32[2,4,256], index: 2, kind: input, shape index: {}]   ;;  %s2365_s3 = inlined_call_operand.vmem [shape: f32[2,8,256], index: 3, kind: input, shape index: {}]   ;;  %s2366_s4 = inlined_call_operand.vmem [shape: f32[9,256], index: 4, kind: input, shape index: {}]   ;;  %s2367_s5 = inlined_call_operand.vmem [shape: f32[4,9], index: 5, kind: input, shape index: {}]   ;;  %s2368_s6 = inlined_call_operand.vmem [shape: f32[4,1], index: 6, kind: input, shape index: {}]   ;;  %s2369_s7 = inlined_call_operand.vmem [shape: f32[4,4], index: 7, kind: input, shape index: {}]   ;;  %s2370_s8 = inlined_call_operand.vmem [shape: f32[4,1], index: 8, kind: input, shape index: {}]   ;;  %s2371_s9 = inlined_call_operand.vmem [shape: f32[4,4], index: 9, kind: input, shape index: {}]   ;;  %s2372_s10 = inlined_call_operand.vmem [shape: f32[4,1], index: 10, kind: input, shape index: {}]   ;;  %s2373_s11 = inlined_call_operand.vmem [shape: f32[4,1], index: 11, kind: input, shape index: {}]   ;;  %s2374_s12 = inlined_call_operand.vmem [shape: f32[4,9], index: 12, kind: input, shape index: {}]   ;;  %s2375_s13 = inlined_call_operand.vmem [shape: f32[4,1], index: 13, kind: input, shape index: {}]   ;;  %s2376_s14 = inlined_call_operand.vmem [shape: f32[4,4], index: 14, kind: input, shape index: {}]   ;;  %s2377_s15 = inlined_call_operand.vmem [shape: f32[4,1], index: 15, kind: input, shape index: {}]   ;;  %s2378_s16 = inlined_call_operand.vmem [shape: f32[8,4], index: 16, kind: input, shape index: {}]   ;;  %s2379_s17 = inlined_call_operand.vmem [shape: f32[8,4], index: 17, kind: input, shape index: {}]   ;;  %s2380_s18 = inlined_call_operand.vmem [shape: f32[8,1], index: 18, kind: input, shape index: {}]   ;;  %s2381_s19 = inlined_call_operand.vmem [shape: f32[2,8,256], index: 19, kind: output, shape index: {}]  }
   0x1   :  { %2382 = sst [smem:[#allocation2_spill]] %s2362_s0  ;;  %s1979_s0 = smov 0  }
   0x2   :  { %2383 = sst [smem:[#allocation3_spill]] %s2363_s1 }
   0x3   :  { %2384 = sst [smem:[#allocation4_spill]] %s2364_s2 }
   0x4   :  { %2385 = sst [smem:[#allocation5_spill]] %s2365_s3 }
   0x5 LB: > { %s1720_s30 = sadd.s32 4294967295, %s1858_s0   ;;  %p1724_p0 = scmp.ge.s32.totalorder %s1858_s0, 1  ;;  %s1858_s0 = sphi %s1979_s0, %s29_s0  }
   0x6   : > { %p567_p1 = scmp.lt.s32.totalorder %s1858_s0, 3 }
   0x8   : > { %p568_p2 = pnand %p1724_p0, %p567_p1 }
   0x9   : > { %v668_v0 = vld [vmem:[%s2367_s5] sm:$0xf] (!%p568_p2)  ;;  %p638_p3 = scmp.lt.s32.totalorder (!%p568_p2), %s1720_s30, 1  ;;  %v1860_v1 = vmov (!%p568_p2), 1   ;;  %v1861_v2 = vmov (!%p568_p2), 4   ;;  %s2386_s23 = sld [smem:[#allocation2_spill]] (!%p568_p2)  ;;  %v683_v25 = vlaneseq (!%p568_p2) }
   0xa   : > { %571 = sbr.rel (%p568_p2) target bundleno = 2100 (0x834), region = 96  ;;  %1810 = vset.pattern.permute.xlu1 (!%p568_p2), %v1860_v1  ;;  %1808 = vset.pattern.permute.xlu0 (!%p568_p2), %v1861_v2  ;;  %v1862_v3 = vmov (!%p568_p2), 0   ;;  %s1863_s25 = smov (!%p568_p2), 17   ;;  %v1864_v6 = vmov (!%p568_p2), 2   ;;  %v1866_v7 = vmov (!%p568_p2), 3   ;;  %v1867_v8 = vmov (!%p568_p2), 5  }
   0xb   : > { %724 = vperm.xlu1 (!%p568_p2), %1810, %v668_v0   ;;  %671 = vperm.xlu0 (!%p568_p2), %1808, %v668_v0   ;;  %s1865_s3 = smov (!%p568_p2), 16   ;;  %s1868_s26 = smov (!%p568_p2), 15   ;;  %v1869_v9 = vmov (!%p568_p2), 6   ;;  %v1870_v10 = vmov (!%p568_p2), 7   ;;  %v1872_v11 = vmov (!%p568_p2), 8   ;;  %v1877_v13 = vmov (!%p568_p2), 0.0  }
   0xc   : > { %s1871_s27 = smov (!%p568_p2), 1   ;;  %s1873_s28 = smov (!%p568_p2), 127   ;;  %v881_v12 = vld [vmem:[%s2368_s6] sm:$0xf] (!%p568_p2)  ;;  %971 = vmatprep.mubr.f32.mxu1 (!%p568_p2), %v1877_v13  ;;  %1774 = vmatprep.subr.mxu0 (!%p568_p2), %v1877_v13  ;;  %v2060_v27 = vshrl.u32 (!%p568_p2), %v683_v25, 7  ;;  %v2064_v29 = vand.u32 (!%p568_p2), 127, %v683_v25 }
   0xd   : > { %s1874_s29 = smov (!%p568_p2), 111   ;;  %s1875_s22 = smov (!%p568_p2), 113   ;;  %v890_v14 = vld [vmem:[%s2370_s8] sm:$0xf] (!%p568_p2)  ;;  %v2075_v33 = vld [vmem:[%s2366_s4 + $0x8] sm:$0xff] (!%p568_p2)  ;;  %vm900_vm8 = vcmask (!%p568_p2), 1043456  }
   0xe   : > { %s1876_s2 = smov (!%p568_p2), 112   ;;  %v690_v31 = vsub.s32 (!%p568_p2), 0, %v2060_v27  ;;  %v2070_v32 = vld [vmem:[%s2366_s4] sm:$0xff] (!%p568_p2)  ;;  %vm685_vm0 = vcmp.lt.s32.totalorder (!%p568_p2), %v2064_v29, 17  ;;  %v715_v34 = vsub.s32 (!%p568_p2), 1, %v2060_v27  ;;  %vm710_vm1 = vcmp.lt.s32.totalorder (!%p568_p2), %v2064_v29, 16 }
   0xf   : > { %1809 = vset.pattern.permute.xlu0 (!%p568_p2), %v1862_v3  ;;  %1818 = vset.pattern.permute.xlu1 (!%p568_p2), %v1862_v3  ;;  %v740_v39 = vsub.s32 (!%p568_p2), 2, %v2060_v27  ;;  %v765_v42 = vsub.s32 (!%p568_p2), 3, %v2060_v27  ;;  %vm735_vm2 = vcmp.lt.s32.totalorder (!%p568_p2), %v2064_v29, 15  ;;  %vm760_vm3 = vcmp.lt.s32.totalorder (!%p568_p2), %v2064_v29, 1  ;;  %s2387_s20 = sld [smem:[#allocation3_spill]] (!%p568_p2) }
  0x10   : > { %699 = vperm.xlu0 (!%p568_p2), %1809, %v668_v0   ;;  %v2082_v37 = vrot.slane (!%p568_p2), %v2070_v32, %v690_v31  ;;  %v2085_v38 = vrot.slane (!%p568_p2), %v2075_v33, %v690_v31  ;;  %v2095_v43 = vrot.slane (!%p568_p2), %v2070_v32, %v715_v34  ;;  %v2098_v44 = vrot.slane (!%p568_p2), %v2075_v33, %v715_v34 }
  0x11   : > { %s2391_s30 = smov (!%p638_p3, %s1720_s30), 1  ;;  %v2108_v50 = vrot.slane %v2070_v32, %v740_v39  ;;  %v2111_v51 = vrot.slane %v2075_v33, %v740_v39  ;;  %v2117_v53 = vrot.slane %v2070_v32, %v765_v42  ;;  %v790_v54 = vsub.s32 5, %v2060_v27 }
  0x12   : > { %s1995_s1 = sshll.u32 %s2391_s30, 3  ;;  %v815_v55 = vsub.s32 6, %v2060_v27  ;;  %v2130_v63 = vrot.slane %v2075_v33, %v765_v42  ;;  %vm785_vm4 = vcmp.lt.s32.totalorder %v2064_v29, 127  ;;  %vm810_vm5 = vcmp.lt.s32.totalorder %v2064_v29, 113 }
  0x13   : > { %s642_s24 = scalar_lea.vmem %s2386_s23, %s1995_s1  ;;  %vm835_vm6 = vcmp.lt.s32.totalorder %v2064_v29, 112  ;;  %vm860_vm7 = vcmp.lt.s32.totalorder %v2064_v29, 111  ;;  %vm896_vm9 = vcmask 31744   ;;  %vm1878_vm10 = vmmov 0   ;;  %v1332_v29 = vld [vmem:[%s2376_s14] sm:$0xf] }
  0x14   : > { %v2002_v4 = vld [vmem:[%s642_s24] sm:$0xff]  ;;  %1811 = vset.pattern.permute.xlu0 %v1864_v6  ;;  %1776 = vmatprep.mubr.msk.f32.mxu0 %vm1878_vm10, %v1877_v13 }
  0x15   : > { %679 = vrot.lane.b32.xlu1 %v2002_v4, %s1863_s25  ;;  %v2009_v5 = vcombine.high %v2002_v4, %v2002_v4  ;;  %749 = vperm.xlu0 %1811, %v668_v0   ;;  %s647_s21 = scalar_lea.vmem %s2387_s20, %s1995_s1  ;;  %s2389_s20 = sld [smem:[#allocation5_spill]] }
  0x19   : > { %681 = vrot.lane.b32.xlu1 %v2009_v5, %s1863_s25  ;;  %1812 = vset.pattern.permute.xlu0 %v1866_v7 }
  0x1a   : > { %774 = vperm.xlu0 %1812, %v668_v0  }
  0x1d   : > { %706 = vrot.lane.b32.xlu1 %v2002_v4, %s1865_s3 }
  0x1e   : > { %1813 = vset.pattern.permute.xlu0 %v1867_v8 }
  0x1f   : > { %799 = vperm.xlu0 %1813, %v668_v0  }
  0x21   : > { %708 = vrot.lane.b32.xlu1 %v2009_v5, %s1865_s3 }
  0x23   : > { %1814 = vset.pattern.permute.xlu0 %v1869_v9 }
  0x24   : > { %824 = vperm.xlu0 %1814, %v668_v0  }
  0x25   : > { %731 = vrot.lane.b32.xlu1 %v2002_v4, %s1868_s26 }
  0x28   : > { %1815 = vset.pattern.permute.xlu0 %v1870_v10 }
  0x29   : > { %733 = vrot.lane.b32.xlu1 %v2009_v5, %s1868_s26  ;;  %849 = vperm.xlu0 %1815, %v668_v0  }
  0x2d   : > { %756 = vrot.lane.b32.xlu1 %v2002_v4, %s1871_s27  ;;  %1816 = vset.pattern.permute.xlu0 %v1872_v11 }
  0x2e   : > { %874 = vperm.xlu0 %1816, %v668_v0  }
  0x31   : > { %758 = vrot.lane.b32.xlu1 %v2009_v5, %s1871_s27 }
  0x32   : > { %856 = vrot.lane.b32.xlu0 %v2002_v4, %s1874_s29 }
  0x33   : > { %1817 = vset.pattern.permute.xlu0 %v1862_v3 }
  0x35   : > { %781 = vrot.lane.b32.xlu1 %v2002_v4, %s1873_s28 }
  0x36   : > { %884 = vperm.xlu0 %1817, %v881_v12  }
  0x39   : > { %783 = vrot.lane.b32.xlu1 %v2009_v5, %s1873_s28 }
  0x3d   : > { %806 = vrot.lane.b32.xlu1 %v2002_v4, %s1875_s22 }
  0x41   : > { %808 = vrot.lane.b32.xlu1 %v2009_v5, %s1875_s22 }
  0x45   : > { %831 = vrot.lane.b32.xlu1 %v2002_v4, %s1876_s2 }
  0x49   : > { %833 = vrot.lane.b32.xlu1 %v2009_v5, %s1876_s2 }
  0x4d   : > { %858 = vrot.lane.b32.xlu1 %v2009_v5, %s1874_s29 }
  0x51   : > { %893 = vperm.xlu1 %1818, %v890_v14  }
  0x8a   : > { %v2056_v15 = vpop.permute.xlu1 %724  ;;  %v672_v19 = vpop.permute.xlu0 %671 }
  0x8b   : > { %v677_v61 = vmul.f32 %v672_v19, %v2002_v4  ;;  %v678_v62 = vmul.f32 %v2009_v5, %v672_v19  ;;  %v2140_v4 = vrot.slane %v2070_v32, %v790_v54  ;;  %v2143_v5 = vrot.slane %v2075_v33, %v790_v54 }
  0x8e   : > { %v680_v16 = vpop.permute.xlu1 %679 }
  0x8f   : > { %v700_v21 = vpop.permute.xlu0 %699 }
  0x92   : > { %v682_v17 = vpop.permute.xlu1 %681 }
  0x93   : > { %v686_v40 = vsel %vm685_vm0, %v680_v16, %v682_v17  ;;  %v687_v41 = vsel %vm685_vm0, %v682_v17, %v680_v16 }
  0x94   : > { %v2058_v24 = vpop.permute.xlu0 %749  ;;  %v696_v48 = vmul.f32 %v2082_v37, %v687_v41  ;;  %v697_v49 = vmul.f32 %v2085_v38, %v686_v40  ;;  %v840_v40 = vsub.s32 7, %v2060_v27 }
  0x96   : > { %v707_v18 = vpop.permute.xlu1 %706  ;;  %v702_v0 = vmul.f32 %v700_v21, %v696_v48  ;;  %v703_v12 = vmul.f32 %v700_v21, %v697_v49 }
  0x98   : > { %v704_v34 = vadd.f32 %v702_v0, %v677_v61  ;;  %v705_v39 = vadd.f32 %v703_v12, %v678_v62 }
  0x99   : > { %v2062_v28 = vpop.permute.xlu0 %774 }
  0x9a   : > { %v709_v20 = vpop.permute.xlu1 %708 }
  0x9b   : > { %v711_v46 = vsel %vm710_vm1, %v707_v18, %v709_v20  ;;  %v712_v47 = vsel %vm710_vm1, %v709_v20, %v707_v18 }
  0x9c   : > { %v721_v56 = vmul.f32 %v2095_v43, %v712_v47  ;;  %v722_v57 = vmul.f32 %v2098_v44, %v711_v46 }
  0x9e   : > { %v732_v22 = vpop.permute.xlu1 %731  ;;  %v2079_v35 = vpop.permute.xlu0 %799  ;;  %v727_v19 = vmul.f32 %v2056_v15, %v721_v56  ;;  %v728_v20 = vmul.f32 %v2056_v15, %v722_v57  ;;  %v2158_v15 = vrot.slane %v2075_v33, %v815_v55 }
  0xa0   : > { %v729_v49 = vadd.f32 %v727_v19, %v704_v34  ;;  %v730_v54 = vadd.f32 %v728_v20, %v705_v39  ;;  %v2199_v20 = vld [vmem:[%s2366_s4 + $0x18] ss:$0 sm:$0xff] }
  0xa2   : > { %v734_v23 = vpop.permute.xlu1 %733 }
  0xa3   : > { %v2113_v52 = vpop.permute.xlu0 %824  ;;  %v736_v58 = vsel %vm735_vm2, %v732_v22, %v734_v23  ;;  %v737_v59 = vsel %vm735_vm2, %v734_v23, %v732_v22  ;;  %v2149_v22 = vrot.slane %v2070_v32, %v815_v55 }
  0xa4   : > { %v746_v17 = vmul.f32 %v2108_v50, %v737_v59  ;;  %v747_v18 = vmul.f32 %v2111_v51, %v736_v58  ;;  %v2175_v58 = vrot.slane %v2070_v32, %v840_v40  ;;  %v2178_v59 = vrot.slane %v2075_v33, %v840_v40 }
  0xa6   : > { %v757_v26 = vpop.permute.xlu1 %756  ;;  %v752_v41 = vmul.f32 %v2058_v24, %v746_v17  ;;  %v753_v42 = vmul.f32 %v2058_v24, %v747_v18 }
  0xa8   : > { %v850_v21 = vpop.permute.xlu0 %849  ;;  %v755_v61 = vadd.f32 %v753_v42, %v730_v54 }
  0xaa   : > { %v759_v30 = vpop.permute.xlu1 %758 }
  0xab   : > { %v761_v14 = vsel %vm760_vm3, %v757_v26, %v759_v30  ;;  %v762_v16 = vsel %vm760_vm3, %v759_v30, %v757_v26 }
  0xac   : > { %v771_v25 = vmul.f32 %v2117_v53, %v762_v16  ;;  %v772_v26 = vmul.f32 %v2130_v63, %v761_v14 }
  0xad   : > { %v875_v24 = vpop.permute.xlu0 %874 }
  0xae   : > { %v782_v36 = vpop.permute.xlu1 %781  ;;  %v777_v27 = vmul.f32 %v2062_v28, %v771_v25  ;;  %v778_v55 = vmul.f32 %v2062_v28, %v772_v26 }
  0xb0   : > { %v780_v14 = vadd.f32 %v778_v55, %v755_v61 }
  0xb1   : > { %v857_v26 = vpop.permute.xlu0 %856 }
  0xb2   : > { %v784_v45 = vpop.permute.xlu1 %783 }
  0xb3   : > { %v786_v30 = vsel %vm785_vm4, %v782_v36, %v784_v45  ;;  %v787_v31 = vsel %vm785_vm4, %v784_v45, %v782_v36 }
  0xb4   : > { %v796_v48 = vmul.f32 %v2140_v4, %v786_v30  ;;  %v797_v36 = vmul.f32 %v2143_v5, %v787_v31 }
  0xb6   : > { %v807_v60 = vpop.permute.xlu1 %806  ;;  %v802_v62 = vmul.f32 %v2079_v35, %v796_v48  ;;  %v803_v0 = vmul.f32 %v2079_v35, %v797_v36  ;;  %v2194_v35 = vld [vmem:[%s2366_s4 + $0x10] ss:$0 sm:$0xff] }
  0xb8   : > { %v805_v25 = vadd.f32 %v803_v0, %v780_v14  ;;  %v983_v14 = vld [vmem:[%s2371_s9] sm:$0xf] }
  0xba   : > { %v809_v23 = vpop.permute.xlu1 %808 }
  0xbb   : > { %v811_v46 = vsel %vm810_vm5, %v807_v60, %v809_v23  ;;  %v812_v47 = vsel %vm810_vm5, %v809_v23, %v807_v60  ;;  %v754_v60 = vadd.f32 %v752_v41, %v729_v49  ;;  %v885_v49 = vpop.permute.xlu0 %884 }
  0xbc   : > { %v821_v56 = vmul.f32 %v2149_v22, %v811_v46  ;;  %v822_v57 = vmul.f32 %v2158_v15, %v812_v47 }
  0xbd   : > { %v779_v28 = vadd.f32 %v777_v27, %v754_v60 }
  0xbe   : > { %v832_v45 = vpop.permute.xlu1 %831  ;;  %v827_v33 = vmul.f32 %v2113_v52, %v821_v56  ;;  %v828_v17 = vmul.f32 %v2113_v52, %v822_v57  ;;  %v889_v56 = vld [vmem:[%s2369_s7] sm:$0xf] }
  0xbf   : > { %v804_v23 = vadd.f32 %v802_v62, %v779_v28 }
  0xc0   : > { %v830_v41 = vadd.f32 %v828_v17, %v805_v25 }
  0xc1   : > { %v829_v40 = vadd.f32 %v827_v33, %v804_v23 }
  0xc2   : > { %v834_v12 = vpop.permute.xlu1 %833 }
  0xc3   : > { %v836_v16 = vsel %vm835_vm6, %v832_v45, %v834_v12  ;;  %v837_v32 = vsel %vm835_vm6, %v834_v12, %v832_v45 }
  0xc4   : > { %v846_v18 = vmul.f32 %v2175_v58, %v836_v16  ;;  %v847_v19 = vmul.f32 %v2178_v59, %v837_v32 }
  0xc6   : > { %v852_v30 = vmul.f32 %v850_v21, %v846_v18  ;;  %v853_v31 = vmul.f32 %v850_v21, %v847_v19  ;;  %v859_v52 = vpop.permute.xlu1 %858 }
  0xc7   : > { %v861_v34 = vsel %vm860_vm7, %v857_v26, %v859_v52  ;;  %v862_v39 = vsel %vm860_vm7, %v859_v52, %v857_v26 }
  0xc8   : > { %v871_v42 = vmul.f32 %v2194_v35, %v861_v34  ;;  %v872_v46 = vmul.f32 %v2199_v20, %v862_v39  ;;  %v854_v36 = vadd.f32 %v852_v30, %v829_v40  ;;  %v855_v45 = vadd.f32 %v853_v31, %v830_v41  ;;  %v1158_v34 = vld [vmem:[%s2372_s10] sm:$0xf] }
  0xc9   : > { %v1188_v39 = vld [vmem:[%s2374_s12] sm:$0xf] }
  0xca   : > { %v877_v47 = vmul.f32 %v875_v24, %v871_v42  ;;  %v878_v48 = vmul.f32 %v875_v24, %v872_v46 }
  0xcc   : > { %v879_v54 = vadd.f32 %v877_v47, %v854_v36  ;;  %v880_v21 = vadd.f32 %v878_v48, %v855_v45 }
  0xce   : > { %v887_v27 = vadd.f32 %v885_v49, %v879_v54  ;;  %v888_v55 = vadd.f32 %v885_v49, %v880_v21 }
  0xd0   : > { %1737 = vmatprep.subr.msk.mxu1 %vm900_vm8, %v888_v55  ;;  %v894_v24 = vpop.permute.xlu1 %893 }
  0xd1   : > { %1738 = vmatpush1.msk.msra.mxu1 %vm900_vm8, %v887_v27 }
  0xd2   : > { %1739 = vmatmul.mubr.msk.f32.vlgmr.msra.gmra.mrb[0].mxu1 %vm896_vm9, %v889_v56  ;;  %1769 = vmatprep.subr.mxu1 %v1877_v13 }
  0xd3   : > { %1771 = vmatprep.mubr.msk.f32.mxu1 %vm1878_vm10, %v1877_v13 }
 0x1a5   : > { %v973_v57 = vpop.f32.mrb[0].mxu1 }
 0x1a6   : > { %v974_v60 = vadd.f32 %v973_v57, %v894_v24  ;;  %v975_v61 = vpop.f32.mrb[1].mxu1 }
 0x1a7   : > { %v976_v62 = vadd.f32 %v975_v61, %v894_v24 }
 0x1a8   : > { %v978_v0 = vsel %vm900_vm8, %v974_v60, 0.0 }
 0x1a9   : > { %v979_v12 = vsel %vm900_vm8, %v976_v62, 0.0 }
 0x1aa   : > { %v980_v28 = vadd.f32 %v979_v12, %v978_v0  ;;  %v1615_v0 = vld [vmem:[%s2380_s18] sm:$0xff] }
 0x1ac   : > { %981 = vadd.xlane.f32.xlu1 %v980_v28 }
 0x239   : > { %v982_v16 = vpop.xlane.xlu1 %981 }
 0x23a   : > { %1770 = vmatpush3.msk.msra.mxu1 %vm900_vm8, %v982_v16 }
 0x23b   : > { %1772 = vmatmul.mubr.msk.f32.vlgmr.msra.gmra.mrb[2].mxu1 %vm896_vm9, %v983_v14 }
 0x23c   : > { %1412 = vmatprep.mubr.f32.mxu1 %v1877_v13 }
 0x30e   : > { %v1056_v32 = vpop.f32.mrb[2].mxu1 }
 0x30f   : > { %v1060_v33 = vmul.f32 0.00390625, %v1056_v32  ;;  %v1773_v17 = vpop.f32.mrb[3].mxu1 }
 0x311   : > { %1063 = vperm.xlu0 %1817, %v1060_v33  }
 0x390   : > { %v1064_v18 = vpop.permute.xlu0 %1063 }
 0x391   : > { %v1066_v19 = vsub.f32 %v974_v60, %v1064_v18  ;;  %v1067_v23 = vsub.f32 %v976_v62, %v1064_v18  ;;  %v1324_v62 = vld [vmem:[%s2375_s13] sm:$0xf] }
 0x393   : > { %v1068_v25 = vmul.f32 %v1066_v19, %v1066_v19  ;;  %v1069_v26 = vmul.f32 %v1067_v23, %v1067_v23 }
 0x395   : > { %v1070_v30 = vsel %vm900_vm8, %v1068_v25, 0.0  ;;  %v1071_v31 = vsel %vm900_vm8, %v1069_v26, 0.0 }
 0x396   : > { %v1072_v52 = vadd.f32 %v1071_v31, %v1070_v30 }
 0x398   : > { %1073 = vadd.xlane.f32.xlu0 %v1072_v52 }
 0x3ae   : > { %1161 = vperm.xlu0 %1817, %v1158_v34  }
 0x3b2   : > { %1205 = vperm.xlu0 %1817, %v1188_v39  }
 0x3b6   : > { %1821 = vset.pattern.permute.xlu0 %v1864_v6 }
 0x3b7   : > { %1237 = vperm.xlu0 %1821, %v1188_v39  }
 0x3bb   : > { %1822 = vset.pattern.permute.xlu0 %v1866_v7 }
 0x3bc   : > { %1253 = vperm.xlu0 %1822, %v1188_v39  }
 0x3c0   : > { %1823 = vset.pattern.permute.xlu0 %v1867_v8 }
 0x3c1   : > { %1269 = vperm.xlu0 %1823, %v1188_v39  }
 0x3c5   : > { %1824 = vset.pattern.permute.xlu0 %v1869_v9  ;;  %v1166_v9 = vld [vmem:[%s2373_s11] sm:$0xf] }
 0x3c6   : > { %1285 = vperm.xlu0 %1824, %v1188_v39  }
 0x3ca   : > { %1825 = vset.pattern.permute.xlu0 %v1870_v10 }
 0x3cb   : > { %1301 = vperm.xlu0 %1825, %v1188_v39  }
 0x3cf   : > { %1826 = vset.pattern.permute.xlu0 %v1872_v11 }
 0x425   : > { %v1074_v40 = vpop.xlane.xlu0 %1073 }
 0x426   : > { %1775 = vmatpush3.msk.msra.mxu0 %vm900_vm8, %v1074_v40 }
 0x427   : > { %1777 = vmatmul.mubr.msk.f32.vlgmr.msra.gmra.mrb[0].mxu0 %vm896_vm9, %v983_v14 }
 0x428   : > { %1528 = vmatprep.mubr.f32.mxu0 %v1877_v13 }
 0x42d   : > { %v1162_v47 = vpop.permute.xlu0 %1161 }
 0x431   : > { %v1206_v28 = vpop.permute.xlu0 %1205 }
 0x436   : > { %v1238_v16 = vpop.permute.xlu0 %1237 }
 0x43b   : > { %v1254_v33 = vpop.permute.xlu0 %1253 }
 0x4fa   : > { %v1144_v6 = vpop.f32.mrb[0].mxu0 }
 0x4fb   : > { %v1148_v7 = vmul.f32 0.00390625, %v1144_v6  ;;  %v1778_v41 = vpop.f32.mrb[1].mxu0 }
 0x4fd   : > { %v1149_v8 = vadd.f32 1e-06, %v1148_v7 }
 0x4ff   : > { %1830 = vrsqrt.f32 %v1149_v8 }
 0x509   : > { %v1831_v42 = vpop.eup %1830 }
 0x50a   : > { %1153 = vperm.xlu1 %1818, %v1831_v42  }
 0x50e   : > { %1169 = vperm.xlu1 %1818, %v1166_v9  }
 0x512   : > { %1819 = vset.pattern.permute.xlu1 %v1861_v2 }
 0x513   : > { %1191 = vperm.xlu1 %1819, %v1188_v39  }
 0x517   : > { %1820 = vset.pattern.permute.xlu1 %v1860_v1 }
 0x518   : > { %1221 = vperm.xlu1 %1820, %v1188_v39  }
 0x51c   : > { %1828 = vset.pattern.permute.xlu1 %v1862_v3 }
 0x589   : > { %v1154_v10 = vpop.permute.xlu1 %1153 }
 0x58a   : > { %v1156_v11 = vmul.f32 %v1154_v10, %v1066_v19  ;;  %v1157_v46 = vmul.f32 %v1154_v10, %v1067_v23  ;;  %v1270_v19 = vpop.permute.xlu0 %1269 }
 0x58c   : > { %v1164_v48 = vmul.f32 %v1162_v47, %v1156_v11  ;;  %v1165_v36 = vmul.f32 %v1162_v47, %v1157_v46 }
 0x58d   : > { %v1170_v45 = vpop.permute.xlu1 %1169 }
 0x58e   : > { %v1172_v49 = vadd.f32 %v1170_v45, %v1164_v48  ;;  %v1173_v54 = vadd.f32 %v1170_v45, %v1165_v36  ;;  %v1286_v25 = vpop.permute.xlu0 %1285 }
 0x590   : > { %v1744_v21 = vmul.f32 -1.442695, %v1172_v49  ;;  %v1745_v27 = vmul.f32 -1.442695, %v1173_v54 }
 0x592   : > { %1832 = vpow2.f32 %v1744_v21  ;;  %v1192_v12 = vpop.permute.xlu1 %1191  ;;  %v2273_v31 = vpop.permute.xlu0 %1301 }
 0x593   : > { %1834 = vpow2.f32 %v1745_v27 }
 0x597   : > { %v1222_v14 = vpop.permute.xlu1 %1221 }
 0x59c   : > { %v1833_v2 = vpop.eup %1832 }
 0x59d   : > { %v1835_v55 = vpop.eup %1834  ;;  %v1180_v56 = vadd.f32 1.0, %v1833_v2 }
 0x59e   : > { %v1181_v1 = vadd.f32 1.0, %v1835_v55 }
 0x59f   : > { %1836 = vrcp.f32 %v1180_v56 }
 0x5a0   : > { %1838 = vrcp.f32 %v1181_v1 }
 0x5a9   : > { %v1837_v24 = vpop.eup %1836 }
 0x5aa   : > { %v1839_v57 = vpop.eup %1838  ;;  %v1186_v60 = vmul.f32 %v1837_v24, %v1172_v49 }
 0x5ab   : > { %v1187_v61 = vmul.f32 %v1839_v57, %v1173_v54 }
 0x5ac   : > { %1196 = vrot.lane.b32.xlu0 %v1186_v60, %s1863_s25 }
 0x5ad   : > { %1198 = vrot.lane.b32.xlu1 %v1187_v61, %s1863_s25  ;;  %v1195_v54 = vmul.f32 %v1192_v12, %v1187_v61  ;;  %s2388_s25 = sld [smem:[#allocation4_spill]] }
 0x5b0   : > { %1317 = vperm.xlu0 %1826, %v1188_v39  }
 0x5b1   : > { %1212 = vrot.lane.b32.xlu1 %v1186_v60, %s1865_s3 }
 0x5b4   : > { %1308 = vrot.lane.b32.xlu0 %v1186_v60, %s1874_s29 }
 0x5b5   : > { %1214 = vrot.lane.b32.xlu1 %v1187_v61, %s1865_s3  ;;  %1827 = vset.pattern.permute.xlu0 %v1862_v3  ;;  %v1333_v3 = vld [vmem:[%s2377_s15] sm:$0xf]  ;;  %s652_s3 = scalar_lea.vmem %s2388_s25, %s1995_s1 }
 0x5b8   : > { %1327 = vperm.xlu0 %1827, %v1324_v62  }
 0x5b9   : > { %1228 = vrot.lane.b32.xlu1 %v1186_v60, %s1868_s26 }
 0x5bd   : > { %1230 = vrot.lane.b32.xlu1 %v1187_v61, %s1868_s26 }
 0x5c1   : > { %1244 = vrot.lane.b32.xlu1 %v1186_v60, %s1871_s27 }
 0x5c5   : > { %1246 = vrot.lane.b32.xlu1 %v1187_v61, %s1871_s27 }
 0x5c9   : > { %1260 = vrot.lane.b32.xlu1 %v1186_v60, %s1873_s28 }
 0x5cd   : > { %1262 = vrot.lane.b32.xlu1 %v1187_v61, %s1873_s28 }
 0x5d1   : > { %1276 = vrot.lane.b32.xlu1 %v1186_v60, %s1875_s22 }
 0x5d5   : > { %1278 = vrot.lane.b32.xlu1 %v1187_v61, %s1875_s22 }
 0x5d9   : > { %1292 = vrot.lane.b32.xlu1 %v1186_v60, %s1876_s2 }
 0x5dd   : > { %1294 = vrot.lane.b32.xlu1 %v1187_v61, %s1876_s2 }
 0x5e1   : > { %1310 = vrot.lane.b32.xlu1 %v1187_v61, %s1874_s29  ;;  %s1763_s29 = sshll.u32 %s2391_s30, 4 }
 0x5e2   : > { %s662_s25 = scalar_lea.vmem %s2381_s19, %s1763_s29 }
 0x5e5   : > { %1336 = vperm.xlu1 %1828, %v1333_v3  }
 0x5e9   : > { %1618 = vperm.xlu1 %1828, %v1615_v0  }
 0x61e   : > { %v1197_v34 = vpop.permute.xlu0 %1196 }
 0x61f   : > { %v1199_v32 = vpop.permute.xlu1 %1198 }
 0x620   : > { %v1200_v40 = vsel %vm685_vm0, %v1197_v34, %v1199_v32  ;;  %v1201_v6 = vsel %vm685_vm0, %v1199_v32, %v1197_v34 }
 0x621   : > { %v1202_v42 = vmul.f32 %v1201_v6, %v2082_v37  ;;  %v1203_v9 = vmul.f32 %v1200_v40, %v2085_v38 }
 0x623   : > { %v1213_v17 = vpop.permute.xlu1 %1212  ;;  %v1208_v36 = vmul.f32 %v1206_v28, %v1202_v42  ;;  %v1209_v45 = vmul.f32 %v1206_v28, %v1203_v9 }
 0x625   : > { %v1211_v62 = vadd.f32 %v1209_v45, %v1195_v54 }
 0x627   : > { %v1215_v18 = vpop.permute.xlu1 %1214 }
 0x628   : > { %v1216_v41 = vsel %vm710_vm1, %v1213_v17, %v1215_v18  ;;  %v1217_v8 = vsel %vm710_vm1, %v1215_v18, %v1213_v17 }
 0x629   : > { %v1218_v10 = vmul.f32 %v1217_v8, %v2095_v43  ;;  %v1219_v11 = vmul.f32 %v1216_v41, %v2098_v44  ;;  %v1194_v44 = vmul.f32 %v1192_v12, %v1186_v60 }
 0x62b   : > { %v1229_v23 = vpop.permute.xlu1 %1228  ;;  %v1224_v21 = vmul.f32 %v1222_v14, %v1218_v10  ;;  %v1225_v27 = vmul.f32 %v1222_v14, %v1219_v11  ;;  %v1210_v57 = vadd.f32 %v1208_v36, %v1194_v44 }
 0x62d   : > { %v1226_v0 = vadd.f32 %v1224_v21, %v1210_v57  ;;  %v1227_v12 = vadd.f32 %v1225_v27, %v1211_v62 }
 0x62f   : > { %v1231_v26 = vpop.permute.xlu1 %1230  ;;  %v1318_v32 = vpop.permute.xlu0 %1317 }
 0x630   : > { %v1232_v46 = vsel %vm735_vm2, %v1229_v23, %v1231_v26  ;;  %v1233_v47 = vsel %vm735_vm2, %v1231_v26, %v1229_v23 }
 0x631   : > { %v1234_v38 = vmul.f32 %v1233_v47, %v2108_v50  ;;  %v1235_v43 = vmul.f32 %v1232_v46, %v2111_v51 }
 0x633   : > { %v1245_v30 = vpop.permute.xlu1 %1244  ;;  %v1240_v50 = vmul.f32 %v1238_v16, %v1234_v38  ;;  %v1241_v3 = vmul.f32 %v1238_v16, %v1235_v43 }
 0x635   : > { %v1242_v18 = vadd.f32 %v1240_v50, %v1226_v0  ;;  %v1243_v23 = vadd.f32 %v1241_v3, %v1227_v12 }
 0x637   : > { %v1247_v52 = vpop.permute.xlu1 %1246 }
 0x638   : > { %v1248_v49 = vsel %vm760_vm3, %v1245_v30, %v1247_v52  ;;  %v1249_v37 = vsel %vm760_vm3, %v1247_v52, %v1245_v30 }
 0x639   : > { %v1250_v55 = vmul.f32 %v1249_v37, %v2117_v53  ;;  %v1251_v56 = vmul.f32 %v1248_v49, %v2130_v63 }
 0x63b   : > { %v1261_v39 = vpop.permute.xlu1 %1260  ;;  %v1256_v28 = vmul.f32 %v1254_v33, %v1250_v55  ;;  %v1257_v14 = vmul.f32 %v1254_v33, %v1251_v56 }
 0x63d   : > { %v1258_v34 = vadd.f32 %v1256_v28, %v1242_v18 }
 0x63f   : > { %v1263_v7 = vpop.permute.xlu1 %1262 }
 0x640   : > { %v1264_v1 = vsel %vm785_vm4, %v1261_v39, %v1263_v7  ;;  %v1265_v24 = vsel %vm785_vm4, %v1263_v7, %v1261_v39  ;;  %v1259_v39 = vadd.f32 %v1257_v14, %v1243_v23 }
 0x641   : > { %v1266_v53 = vmul.f32 %v1264_v1, %v2140_v4  ;;  %v1267_v63 = vmul.f32 %v1265_v24, %v2143_v5 }
 0x643   : > { %v1277_v48 = vpop.permute.xlu1 %1276  ;;  %v1272_v26 = vmul.f32 %v1270_v19, %v1266_v53  ;;  %v1273_v30 = vmul.f32 %v1270_v19, %v1267_v63  ;;  %v1454_v63 = vld [vmem:[%s2379_s17] sm:$0xff] }
 0x645   : > { %v1274_v7 = vadd.f32 %v1272_v26, %v1258_v34  ;;  %v1275_v41 = vadd.f32 %v1273_v30, %v1259_v39  ;;  %v1453_v26 = vld [vmem:[%s2378_s16] sm:$0xff] }
 0x647   : > { %v1279_v2 = vpop.permute.xlu1 %1278 }
 0x648   : > { %v1280_v51 = vsel %vm810_vm5, %v1277_v48, %v1279_v2  ;;  %v1281_v60 = vsel %vm810_vm5, %v1279_v2, %v1277_v48 }
 0x649   : > { %v1282_v17 = vmul.f32 %v1280_v51, %v2149_v22  ;;  %v1283_v16 = vmul.f32 %v1281_v60, %v2158_v15  ;;  %v1309_v15 = vpop.permute.xlu0 %1308 }
 0x64b   : > { %v1293_v61 = vpop.permute.xlu1 %1292  ;;  %v1288_v40 = vmul.f32 %v1286_v25, %v1282_v17  ;;  %v1289_v33 = vmul.f32 %v1286_v25, %v1283_v16 }
 0x64d   : > { %v1291_v11 = vadd.f32 %v1289_v33, %v1275_v41 }
 0x64f   : > { %v1295_v52 = vpop.permute.xlu1 %1294 }
 0x650   : > { %v1296_v4 = vsel %vm835_vm6, %v1293_v61, %v1295_v52  ;;  %v1297_v5 = vsel %vm835_vm6, %v1295_v52, %v1293_v61 }
 0x651   : > { %v1298_v6 = vmul.f32 %v1296_v4, %v2175_v58  ;;  %v1299_v22 = vmul.f32 %v1297_v5, %v2178_v59  ;;  %v1290_v59 = vadd.f32 %v1288_v40, %v1274_v7 }
 0x653   : > { %v1304_v19 = vmul.f32 %v2273_v31, %v1298_v6  ;;  %v1305_v8 = vmul.f32 %v2273_v31, %v1299_v22  ;;  %v1311_v42 = vpop.permute.xlu1 %1310  ;;  %v1328_v31 = vpop.permute.xlu0 %1327 }
 0x654   : > { %v1312_v9 = vsel %vm860_vm7, %v1309_v15, %v1311_v42  ;;  %v1313_v10 = vsel %vm860_vm7, %v1311_v42, %v1309_v15 }
 0x655   : > { %v1314_v25 = vmul.f32 %v2194_v35, %v1312_v9  ;;  %v1315_v58 = vmul.f32 %v2199_v20, %v1313_v10  ;;  %v1306_v46 = vadd.f32 %v1304_v19, %v1290_v59  ;;  %v1307_v47 = vadd.f32 %v1305_v8, %v1291_v11  ;;  %v1419_v35 = vld [vmem:[%s647_s21] sm:$0xff]  ;;  %s657_s21 = scalar_lea.vmem %s2389_s20, %s1763_s29 }
 0x656   : > { %v1420_v20 = vld [vmem:[%s652_s3] sm:$0xff]  ;;  %v1624_v4 = vld [vmem:[%s657_s21 + $0x8] sm:$0xff] }
 0x657   : > { %v1320_v48 = vmul.f32 %v1318_v32, %v1314_v25  ;;  %v1321_v36 = vmul.f32 %v1318_v32, %v1315_v58  ;;  %v1421_v43 = vadd.f32 %v1420_v20, %v1419_v35  ;;  %v1623_v52 = vld [vmem:[%s657_s21] sm:$0xff] }
 0x659   : > { %v1322_v45 = vadd.f32 %v1320_v48, %v1306_v46  ;;  %v1323_v49 = vadd.f32 %v1321_v36, %v1307_v47  ;;  %v1749_v44 = vmul.f32 -1.442695, %v1421_v43 }
 0x65b   : > { %v1330_v37 = vadd.f32 %v1328_v31, %v1322_v45  ;;  %v1331_v38 = vadd.f32 %v1328_v31, %v1323_v49  ;;  %1840 = vpow2.f32 %v1749_v44 }
 0x65d   : > { %1746 = vmatprep.subr.msk.mxu1 %vm900_vm8, %v1331_v38 }
 0x65e   : > { %1747 = vmatpush1.msk.msra.mxu1 %vm900_vm8, %v1330_v37 }
 0x65f   : > { %1748 = vmatmul.mubr.msk.f32.vlgmr.msra.gmra.mrb[4].mxu1 %vm896_vm9, %v1332_v29 }
 0x664   : > { %v1337_v2 = vpop.permute.xlu1 %1336 }
 0x665   : > { %v1841_v54 = vpop.eup %1840 }
 0x666   : > { %v1425_v21 = vadd.f32 1.0, %v1841_v54 }
 0x668   : > { %1842 = vrcp.f32 %v1425_v21 }
 0x672   : > { %v1843_v27 = vpop.eup %1842 }
 0x673   : > { %v1441_v56 = vcombine.high %v1843_v27, %v1843_v27 }
 0x732   : > { %v1414_v55 = vpop.f32.mrb[4].mxu1 }
 0x733   : > { %v1415_v1 = vadd.f32 %v1414_v55, %v1337_v2  ;;  %v1416_v24 = vpop.f32.mrb[5].mxu1 }
 0x734   : > { %v1417_v57 = vadd.f32 %v1416_v24, %v1337_v2 }
 0x735   : > { %v1750_v62 = vmul.f32 -1.442695, %v1415_v1  ;;  %v1443_v50 = vmul.f32 %v1843_v27, %v1415_v1 }
 0x736   : > { %v1751_v3 = vmul.f32 -1.442695, %v1417_v57  ;;  %v1444_v51 = vmul.f32 %v1441_v56, %v1417_v57 }
 0x737   : > { %1844 = vpow2.f32 %v1750_v62  ;;  %v1445_v53 = vadd.f32 %v1443_v50, %v1415_v1 }
 0x738   : > { %1846 = vpow2.f32 %v1751_v3  ;;  %v1446_v60 = vadd.f32 %v1444_v51, %v1417_v57 }
 0x73a   : > { %1752 = vmatprep.subr.msk.mxu0 %vm900_vm8, %v1446_v60 }
 0x73b   : > { %1753 = vmatpush1.msk.msra.mxu0 %vm900_vm8, %v1445_v53 }
 0x73c   : > { %1754 = vmatmul.mubr.msk.f32.vlgmr.msra.gmra.mrb[2].mxu0 %vm896_vm9, %v1454_v63 }
 0x73d   : > { %1608 = vmatprep.mubr.f32.mxu0 %v1877_v13  ;;  %v1619_v13 = vpop.permute.xlu1 %1618 }
 0x741   : > { %v1845_v61 = vpop.eup %1844 }
 0x742   : > { %v1847_v0 = vpop.eup %1846  ;;  %v1434_v12 = vadd.f32 1.0, %v1845_v61 }
 0x743   : > { %v1435_v28 = vadd.f32 1.0, %v1847_v0 }
 0x744   : > { %1848 = vrcp.f32 %v1434_v12 }
 0x745   : > { %1850 = vrcp.f32 %v1435_v28 }
 0x74e   : > { %v1849_v14 = vpop.eup %1848 }
 0x74f   : > { %v1851_v32 = vpop.eup %1850 }
 0x750   : > { %v1449_v17 = vcombine.low %v1849_v14, %v1851_v32 }
 0x752   : > { %v1451_v16 = vmul.f32 %v1449_v17, %v1421_v43 }
 0x754   : > { %v1452_v18 = vadd.f32 %v1451_v16, %v1421_v43 }
 0x756   : > { %v1536_v23 = vcombine.high %v1452_v18, %v1452_v18 }
 0x758   : > { %1755 = vmatprep.subr.msk.mxu0 %vm900_vm8, %v1536_v23 }
 0x759   : > { %1756 = vmatpush1.msk.msra.mxu0 %vm900_vm8, %v1452_v18 }
 0x75a   : > { %1757 = vmatmul.mubr.msk.f32.vlgmr.msra.gmra.mrb[2].mxu0 %vm896_vm9, %v1453_v26 }
 0x82d   : > { %v1610_v30 = vpop.f32.mrb[2].mxu0 }
 0x82e   : > { %v1621_v34 = vadd.f32 %v1619_v13, %v1610_v30  ;;  %v1612_v39 = vpop.f32.mrb[3].mxu0 }
 0x82f   : > { %v1622_v5 = vadd.f32 %v1619_v13, %v1612_v39 }
 0x830   : > { %v1625_v40 = vadd.f32 %v1623_v52, %v1621_v34 }
 0x831   : > { %v1626_v33 = vadd.f32 %v1624_v4, %v1622_v5 }
 0x832   : > { %1627 = vst [vmem:[%s662_s25] sm:$0xff] %v1625_v40 }
 0x833   : > { %1628 = vst [vmem:[%s662_s25 + $0x8] sm:$0xff] %v1626_v33 }
 0x834 PF: > { %s29_s0 = sadd.s32 1, %s1858_s0  }
 0x835   : > { %p26_p4 = scmp.ge.s32.totalorder %s29_s0, 4  }
 0x837   :  { %28 = sbr.rel (!%p26_p4) target bundleno = 5 (0x5), region = 135 }

</bundles_post_ra>
